<compile_context>
chip_gen: v6e
topology: v6e:2x2x1
jax: 0.10.0
libtpu: 0.0.40
codegen_flags: <defaults>
</compile_context>

<pallas_src>
import jax
import jax.numpy as jnp
from jax.experimental import pallas as pl
from jax.experimental.pallas import tpu as pltpu


def attention_kernel(h_ref, w1_ref, b1_ref, w2_ref, z_ref, a_ref):
    """One bag-block per grid step.

    h_ref : (Bb, N, M)  instance features for Bb bags
    w1_ref: (M, L), b1_ref: (1, L), w2_ref: (L, K)
    z_ref : (Bb, K, M)  attention-pooled bag features
    a_ref : (Bb, K, N)  attention weights, already in PyTorch's (K, N) layout
    """
    Bb, N, M = h_ref.shape

    H_all = h_ref[...]                           # (Bb, N, M) f32
    H2 = H_all.reshape(Bb * N, M)                # free leading-dim merge

    # Attention MLP over all Bb*N instance rows at once (one big MXU matmul each).
    hidden = jnp.tanh(
        jnp.dot(H2, w1_ref[...], preferred_element_type=jnp.float32)      # (Bb*N, L)
        + b1_ref[...]                                                      # (1, L) broadcast
    )
    # b2 omitted: softmax over the instance axis cancels a per-branch constant exactly.
    logits_nk = jnp.dot(hidden, w2_ref[...],
                        preferred_element_type=jnp.float32)                # (Bb*N, K)

    # Per bag: tiny (N, K) -> (K, N) XLU transpose, lane-major softmax, natural Z matmul.
    for b in range(Bb):                          # static, unrolled (Bb is small)
        lg_kn = logits_nk[b * N:(b + 1) * N, :].T                          # (K, N)
        lg_kn = lg_kn - jnp.max(lg_kn, axis=-1, keepdims=True)
        e = jnp.exp(lg_kn)
        a_kn = e / jnp.sum(e, axis=-1, keepdims=True)                      # exact divide
        a_ref[b] = a_kn.astype(a_ref.dtype)
        # Z = A @ H : (K, N) @ (N, M) -> (K, M), lane-dense output store.
        z_ref[b] = jnp.dot(a_kn, H_all[b],
                           preferred_element_type=jnp.float32).astype(z_ref.dtype)


def _pick_bag_block(B, N, M, *, vmem_budget_bytes=8 << 20):
    """Largest divisor of B whose double-buffered f32 H tile fits the budget, while keeping
    >= 2 grid steps (when B > 1) so both TensorCores get work on v7x."""
    per_bag = 2 * N * M * 4                      # double-buffered f32 bytes per bag
    cap = max(1, vmem_budget_bytes // per_bag)
    if B > 1:
        cap = min(cap, (B + 1) // 2)
    bb = 1
    for d in range(1, B + 1):
        if B % d == 0 and d <= cap:
            bb = d
    return bb


def attention_forward_batched(x_bags, w1, b1, w2, b2=None, *, bag_block=None):
    """x_bags: (B, N, M) batch of bags. Returns Z: (B, K, M), A: (B, K, N).

    b2 is accepted for API parity with the PyTorch module but is unused: the softmax over
    the instance axis cancels the per-branch bias exactly, so A and Z are unchanged.
    """
    del b2
    B, N, M = x_bags.shape
    L = w1.shape[1]
    K = w2.shape[1]
    if bag_block is None:
        bag_block = _pick_bag_block(B, N, M)
    assert B % bag_block == 0

    b1_2d = b1.reshape(1, L)

    z, a = pl.pallas_call(
        attention_kernel,
        grid=(B // bag_block,),
        out_shape=(
            jax.ShapeDtypeStruct((B, K, M), jnp.float32),   # Z
            jax.ShapeDtypeStruct((B, K, N), jnp.float32),   # A (PyTorch layout directly)
        ),
        in_specs=[
            pl.BlockSpec((bag_block, N, M), lambda g: (g, 0, 0)),   # per-step bag block
            pl.BlockSpec((M, L), lambda g: (0, 0)),                 # w1, VMEM-resident
            pl.BlockSpec((1, L), lambda g: (0, 0)),                 # b1
            pl.BlockSpec((L, K), lambda g: (0, 0)),                 # w2
        ],
        out_specs=(
            pl.BlockSpec((bag_block, K, M), lambda g: (g, 0, 0)),
            pl.BlockSpec((bag_block, K, N), lambda g: (g, 0, 0)),
        ),
        compiler_params=pltpu.CompilerParams(
            dimension_semantics=("parallel",),   # bags independent -> both TCs on v7x
        ),
    )(x_bags, w1, b1_2d, w2)

    return z, a


def attention_forward(x, w1, b1, w2, b2):
    """PyTorch-equivalent single-bag call: x (1, N, M) -> (Z (K, M), A (K, N))."""
    z, a = attention_forward_batched(x, w1, b1, w2, b2)
    return z[0], a[0]


def reference_forward(x, w1, b1, w2, b2):
    """Pure-JAX reference mirroring the PyTorch module (single bag)."""
    H = jnp.squeeze(x, axis=0)
    A = jnp.tanh(H @ w1 + b1) @ w2 + b2        # (N, K)
    A = A.T                                     # (K, N)
    A = jax.nn.softmax(A, axis=1)
    Z = A @ H                                   # (K, M)
    return Z, A


if __name__ == "__main__":
    # net_params: in_features=M, decom_space=L, ATTENTION_BRANCHES=K; B bags, N instances.
    # N = M = 128 keeps both the A (K, N) and Z (K, M) stores lane-dense.
    B, N, M, L, K = 8, 128, 128, 64, 2

    key = jax.random.PRNGKey(0)
    k_x, k_w1, k_b1, k_w2, k_b2 = jax.random.split(key, 5)

    # nn.Linear weights stored pre-transposed as (in, out) so the kernel does H @ W.
    x_bags = jax.random.normal(k_x, (B, N, M), dtype=jnp.float32)
    w1 = jax.random.normal(k_w1, (M, L), dtype=jnp.float32) * 0.1
    b1 = jax.random.normal(k_b1, (L,), dtype=jnp.float32) * 0.1
    w2 = jax.random.normal(k_w2, (L, K), dtype=jnp.float32) * 0.1
    b2 = jax.random.normal(k_b2, (K,), dtype=jnp.float32) * 0.1

    # Batched kernel over all bags (bag_block=4 -> grid of 2 steps).
    Z, A = attention_forward_batched(x_bags, w1, b1, w2, b2)
    Z = jax.block_until_ready(Z)
    A = jax.block_until_ready(A)
    assert Z.shape == (B, K, M) and A.shape == (B, K, N)

    # Reference (vmapped single-bag PyTorch-equivalent math).
    Z_ref, A_ref = jax.vmap(
        lambda xb: reference_forward(xb[None], w1, b1, w2, b2)
    )(x_bags)

    # Exact softmax divide -> tight tolerance (only transcendental/accumulation noise left).
    assert jnp.allclose(A, A_ref, atol=1e-4, rtol=1e-4), "A mismatch"
    assert jnp.allclose(Z, Z_ref, atol=1e-4, rtol=1e-4), "Z mismatch"

    # Single-bag path, exactly mirroring the PyTorch module's (1, N, M) input.
    Z1, A1 = attention_forward(x_bags[:1], w1, b1, w2, b2)
    Z1 = jax.block_until_ready(Z1)
    A1 = jax.block_until_ready(A1)
    Z1_ref, A1_ref = reference_forward(x_bags[:1], w1, b1, w2, b2)
    assert Z1.shape == (K, M) and A1.shape == (K, N)
    assert jnp.allclose(A1, A1_ref, atol=1e-4, rtol=1e-4)
    assert jnp.allclose(Z1, Z1_ref, atol=1e-4, rtol=1e-4)

    print("KERNEL_OK")
</pallas_src>

<mosaic_0001>
module attributes {stable_mosaic.version = 11 : i64} {
  func.func @attention_kernel(%arg0: i32, %arg1: memref<4x128x128xf32, #tpu.memory_space<vmem>>, %arg2: memref<128x64xf32, #tpu.memory_space<vmem>>, %arg3: memref<1x64xf32, #tpu.memory_space<vmem>>, %arg4: memref<64x2xf32, #tpu.memory_space<vmem>>, %arg5: memref<4x2x128xf32, #tpu.memory_space<vmem>>, %arg6: memref<4x2x128xf32, #tpu.memory_space<vmem>>) attributes {dimension_semantics = [#tpu.dimension_semantics<parallel>], iteration_bounds = array<i64: 2>, scalar_prefetch = 0 : i64, scratch_operands = 0 : i64, tpu.core_type = #tpu.core_type<tc>, window_params = [{transform_indices = @transform_0, window_bounds = array<i64: 4, 128, 128>}, {pipeline_mode = #tpu.pipeline_mode<synchronous>, transform_indices = @transform_1, window_bounds = array<i64: 128, 64>}, {pipeline_mode = #tpu.pipeline_mode<synchronous>, transform_indices = @transform_2, window_bounds = array<i64: 1, 64>}, {pipeline_mode = #tpu.pipeline_mode<synchronous>, transform_indices = @transform_3, window_bounds = array<i64: 64, 2>}, {transform_indices = @transform_4, window_bounds = array<i64: 4, 2, 128>}, {transform_indices = @transform_5, window_bounds = array<i64: 4, 2, 128>}]} {
    %c0 = arith.constant 0 : index
    %c0_0 = arith.constant 0 : index
    %c0_1 = arith.constant 0 : index
    %0 = vector.load %arg1[%c0, %c0_0, %c0_1] : memref<4x128x128xf32, #tpu.memory_space<vmem>>, vector<4x128x128xf32>
    %1 = vector.shape_cast %0 : vector<4x128x128xf32> to vector<512x128xf32>
    %c0_2 = arith.constant 0 : index
    %c0_3 = arith.constant 0 : index
    %2 = vector.load %arg2[%c0_2, %c0_3] : memref<128x64xf32, #tpu.memory_space<vmem>>, vector<128x64xf32>
    %cst = arith.constant dense<0.000000e+00> : vector<512x64xf32>
    %3 = tpu.matmul %1, %2, %cst {dimension_numbers = #tpu.dot_dimension_numbers<[1], [0], [0], [1], [0, 0, 1, 1], [], []>} : vector<512x128xf32>, vector<128x64xf32>, vector<512x64xf32> -> vector<512x64xf32>
    %c0_4 = arith.constant 0 : index
    %c0_5 = arith.constant 0 : index
    %4 = vector.load %arg3[%c0_4, %c0_5] : memref<1x64xf32, #tpu.memory_space<vmem>>, vector<1x64xf32>
    %5 = vector.broadcast %4 : vector<1x64xf32> to vector<512x64xf32>
    %6 = arith.addf %3, %5 : vector<512x64xf32>
    %7 = math.tanh %6 : vector<512x64xf32>
    %c0_6 = arith.constant 0 : index
    %c0_7 = arith.constant 0 : index
    %8 = vector.load %arg4[%c0_6, %c0_7] : memref<64x2xf32, #tpu.memory_space<vmem>>, vector<64x2xf32>
    %cst_8 = arith.constant dense<0.000000e+00> : vector<512x2xf32>
    %9 = tpu.matmul %7, %8, %cst_8 {dimension_numbers = #tpu.dot_dimension_numbers<[1], [0], [0], [1], [0, 0, 1, 1], [], []>} : vector<512x64xf32>, vector<64x2xf32>, vector<512x2xf32> -> vector<512x2xf32>
    %10 = vector.extract_strided_slice %9 {offsets = [0, 0], sizes = [128, 2], strides = [1, 1]} : vector<512x2xf32> to vector<128x2xf32>
    %11 = tpu.transpose %10, [1, 0] : vector<128x2xf32> -> vector<2x128xf32>
    %cst_9 = arith.constant dense<0xFF800000> : vector<2xf32>
    %12 = vector.multi_reduction <maximumf>, %11, %cst_9 [1] : vector<2x128xf32> to vector<2xf32>
    %13 = vector.shape_cast %12 : vector<2xf32> to vector<2x1xf32>
    %14 = vector.broadcast %13 : vector<2x1xf32> to vector<2x128xf32>
    %15 = arith.subf %11, %14 : vector<2x128xf32>
    %16 = math.exp %15 : vector<2x128xf32>
    %cst_10 = arith.constant dense<0.000000e+00> : vector<2xf32>
    %17 = vector.multi_reduction <add>, %16, %cst_10 [1] : vector<2x128xf32> to vector<2xf32>
    %18 = vector.shape_cast %17 : vector<2xf32> to vector<2x1xf32>
    %19 = vector.broadcast %18 : vector<2x1xf32> to vector<2x128xf32>
    %20 = arith.divf %16, %19 : vector<2x128xf32>
    %c0_11 = arith.constant 0 : index
    %c0_12 = arith.constant 0 : index
    %c0_13 = arith.constant 0 : index
    %21 = vector.load %arg6[%c0_11, %c0_12, %c0_13] : memref<4x2x128xf32, #tpu.memory_space<vmem>>, vector<1x2x128xf32>
    %22 = vector.shape_cast %21 : vector<1x2x128xf32> to vector<2x128xf32>
    %23 = vector.shape_cast %20 : vector<2x128xf32> to vector<1x2x128xf32>
    tpu.vector_store %arg6[%c0_11, %c0_12, %c0_13], %23 {strides = array<i32>} : memref<4x2x128xf32, #tpu.memory_space<vmem>>, vector<1x2x128xf32>,
    %24 = vector.extract_strided_slice %0 {offsets = [0, 0, 0], sizes = [1, 128, 128], strides = [1, 1, 1]} : vector<4x128x128xf32> to vector<1x128x128xf32>
    %25 = vector.shape_cast %24 : vector<1x128x128xf32> to vector<128x128xf32>
    %cst_14 = arith.constant dense<0.000000e+00> : vector<2x128xf32>
    %26 = tpu.matmul %20, %25, %cst_14 {dimension_numbers = #tpu.dot_dimension_numbers<[1], [0], [0], [1], [0, 0, 1, 1], [], []>} : vector<2x128xf32>, vector<128x128xf32>, vector<2x128xf32> -> vector<2x128xf32>
    %c0_15 = arith.constant 0 : index
    %c0_16 = arith.constant 0 : index
    %c0_17 = arith.constant 0 : index
    %27 = vector.load %arg5[%c0_15, %c0_16, %c0_17] : memref<4x2x128xf32, #tpu.memory_space<vmem>>, vector<1x2x128xf32>
    %28 = vector.shape_cast %27 : vector<1x2x128xf32> to vector<2x128xf32>
    %29 = vector.shape_cast %26 : vector<2x128xf32> to vector<1x2x128xf32>
    tpu.vector_store %arg5[%c0_15, %c0_16, %c0_17], %29 {strides = array<i32>} : memref<4x2x128xf32, #tpu.memory_space<vmem>>, vector<1x2x128xf32>,
    %30 = vector.extract_strided_slice %9 {offsets = [128, 0], sizes = [128, 2], strides = [1, 1]} : vector<512x2xf32> to vector<128x2xf32>
    %31 = tpu.transpose %30, [1, 0] : vector<128x2xf32> -> vector<2x128xf32>
    %cst_18 = arith.constant dense<0xFF800000> : vector<2xf32>
    %32 = vector.multi_reduction <maximumf>, %31, %cst_18 [1] : vector<2x128xf32> to vector<2xf32>
    %33 = vector.shape_cast %32 : vector<2xf32> to vector<2x1xf32>
    %34 = vector.broadcast %33 : vector<2x1xf32> to vector<2x128xf32>
    %35 = arith.subf %31, %34 : vector<2x128xf32>
    %36 = math.exp %35 : vector<2x128xf32>
    %cst_19 = arith.constant dense<0.000000e+00> : vector<2xf32>
    %37 = vector.multi_reduction <add>, %36, %cst_19 [1] : vector<2x128xf32> to vector<2xf32>
    %38 = vector.shape_cast %37 : vector<2xf32> to vector<2x1xf32>
    %39 = vector.broadcast %38 : vector<2x1xf32> to vector<2x128xf32>
    %40 = arith.divf %36, %39 : vector<2x128xf32>
    %c1 = arith.constant 1 : index
    %c0_20 = arith.constant 0 : index
    %c0_21 = arith.constant 0 : index
    %41 = vector.load %arg6[%c1, %c0_20, %c0_21] : memref<4x2x128xf32, #tpu.memory_space<vmem>>, vector<1x2x128xf32>
    %42 = vector.shape_cast %41 : vector<1x2x128xf32> to vector<2x128xf32>
    %43 = vector.shape_cast %40 : vector<2x128xf32> to vector<1x2x128xf32>
    tpu.vector_store %arg6[%c1, %c0_20, %c0_21], %43 {strides = array<i32>} : memref<4x2x128xf32, #tpu.memory_space<vmem>>, vector<1x2x128xf32>,
    %44 = vector.extract_strided_slice %0 {offsets = [1, 0, 0], sizes = [1, 128, 128], strides = [1, 1, 1]} : vector<4x128x128xf32> to vector<1x128x128xf32>
    %45 = vector.shape_cast %44 : vector<1x128x128xf32> to vector<128x128xf32>
    %cst_22 = arith.constant dense<0.000000e+00> : vector<2x128xf32>
    %46 = tpu.matmul %40, %45, %cst_22 {dimension_numbers = #tpu.dot_dimension_numbers<[1], [0], [0], [1], [0, 0, 1, 1], [], []>} : vector<2x128xf32>, vector<128x128xf32>, vector<2x128xf32> -> vector<2x128xf32>
    %c1_23 = arith.constant 1 : index
    %c0_24 = arith.constant 0 : index
    %c0_25 = arith.constant 0 : index
    %47 = vector.load %arg5[%c1_23, %c0_24, %c0_25] : memref<4x2x128xf32, #tpu.memory_space<vmem>>, vector<1x2x128xf32>
    %48 = vector.shape_cast %47 : vector<1x2x128xf32> to vector<2x128xf32>
    %49 = vector.shape_cast %46 : vector<2x128xf32> to vector<1x2x128xf32>
    tpu.vector_store %arg5[%c1_23, %c0_24, %c0_25], %49 {strides = array<i32>} : memref<4x2x128xf32, #tpu.memory_space<vmem>>, vector<1x2x128xf32>,
    %50 = vector.extract_strided_slice %9 {offsets = [256, 0], sizes = [128, 2], strides = [1, 1]} : vector<512x2xf32> to vector<128x2xf32>
    %51 = tpu.transpose %50, [1, 0] : vector<128x2xf32> -> vector<2x128xf32>
    %cst_26 = arith.constant dense<0xFF800000> : vector<2xf32>
    %52 = vector.multi_reduction <maximumf>, %51, %cst_26 [1] : vector<2x128xf32> to vector<2xf32>
    %53 = vector.shape_cast %52 : vector<2xf32> to vector<2x1xf32>
    %54 = vector.broadcast %53 : vector<2x1xf32> to vector<2x128xf32>
    %55 = arith.subf %51, %54 : vector<2x128xf32>
    %56 = math.exp %55 : vector<2x128xf32>
    %cst_27 = arith.constant dense<0.000000e+00> : vector<2xf32>
    %57 = vector.multi_reduction <add>, %56, %cst_27 [1] : vector<2x128xf32> to vector<2xf32>
    %58 = vector.shape_cast %57 : vector<2xf32> to vector<2x1xf32>
    %59 = vector.broadcast %58 : vector<2x1xf32> to vector<2x128xf32>
    %60 = arith.divf %56, %59 : vector<2x128xf32>
    %c2 = arith.constant 2 : index
    %c0_28 = arith.constant 0 : index
    %c0_29 = arith.constant 0 : index
    %61 = vector.load %arg6[%c2, %c0_28, %c0_29] : memref<4x2x128xf32, #tpu.memory_space<vmem>>, vector<1x2x128xf32>
    %62 = vector.shape_cast %61 : vector<1x2x128xf32> to vector<2x128xf32>
    %63 = vector.shape_cast %60 : vector<2x128xf32> to vector<1x2x128xf32>
    tpu.vector_store %arg6[%c2, %c0_28, %c0_29], %63 {strides = array<i32>} : memref<4x2x128xf32, #tpu.memory_space<vmem>>, vector<1x2x128xf32>,
    %64 = vector.extract_strided_slice %0 {offsets = [2, 0, 0], sizes = [1, 128, 128], strides = [1, 1, 1]} : vector<4x128x128xf32> to vector<1x128x128xf32>
    %65 = vector.shape_cast %64 : vector<1x128x128xf32> to vector<128x128xf32>
    %cst_30 = arith.constant dense<0.000000e+00> : vector<2x128xf32>
    %66 = tpu.matmul %60, %65, %cst_30 {dimension_numbers = #tpu.dot_dimension_numbers<[1], [0], [0], [1], [0, 0, 1, 1], [], []>} : vector<2x128xf32>, vector<128x128xf32>, vector<2x128xf32> -> vector<2x128xf32>
    %c2_31 = arith.constant 2 : index
    %c0_32 = arith.constant 0 : index
    %c0_33 = arith.constant 0 : index
    %67 = vector.load %arg5[%c2_31, %c0_32, %c0_33] : memref<4x2x128xf32, #tpu.memory_space<vmem>>, vector<1x2x128xf32>
    %68 = vector.shape_cast %67 : vector<1x2x128xf32> to vector<2x128xf32>
    %69 = vector.shape_cast %66 : vector<2x128xf32> to vector<1x2x128xf32>
    tpu.vector_store %arg5[%c2_31, %c0_32, %c0_33], %69 {strides = array<i32>} : memref<4x2x128xf32, #tpu.memory_space<vmem>>, vector<1x2x128xf32>,
    %70 = vector.extract_strided_slice %9 {offsets = [384, 0], sizes = [128, 2], strides = [1, 1]} : vector<512x2xf32> to vector<128x2xf32>
    %71 = tpu.transpose %70, [1, 0] : vector<128x2xf32> -> vector<2x128xf32>
    %cst_34 = arith.constant dense<0xFF800000> : vector<2xf32>
    %72 = vector.multi_reduction <maximumf>, %71, %cst_34 [1] : vector<2x128xf32> to vector<2xf32>
    %73 = vector.shape_cast %72 : vector<2xf32> to vector<2x1xf32>
    %74 = vector.broadcast %73 : vector<2x1xf32> to vector<2x128xf32>
    %75 = arith.subf %71, %74 : vector<2x128xf32>
    %76 = math.exp %75 : vector<2x128xf32>
    %cst_35 = arith.constant dense<0.000000e+00> : vector<2xf32>
    %77 = vector.multi_reduction <add>, %76, %cst_35 [1] : vector<2x128xf32> to vector<2xf32>
    %78 = vector.shape_cast %77 : vector<2xf32> to vector<2x1xf32>
    %79 = vector.broadcast %78 : vector<2x1xf32> to vector<2x128xf32>
    %80 = arith.divf %76, %79 : vector<2x128xf32>
    %c3 = arith.constant 3 : index
    %c0_36 = arith.constant 0 : index
    %c0_37 = arith.constant 0 : index
    %81 = vector.load %arg6[%c3, %c0_36, %c0_37] : memref<4x2x128xf32, #tpu.memory_space<vmem>>, vector<1x2x128xf32>
    %82 = vector.shape_cast %81 : vector<1x2x128xf32> to vector<2x128xf32>
    %83 = vector.shape_cast %80 : vector<2x128xf32> to vector<1x2x128xf32>
    tpu.vector_store %arg6[%c3, %c0_36, %c0_37], %83 {strides = array<i32>} : memref<4x2x128xf32, #tpu.memory_space<vmem>>, vector<1x2x128xf32>,
    %84 = vector.extract_strided_slice %0 {offsets = [3, 0, 0], sizes = [1, 128, 128], strides = [1, 1, 1]} : vector<4x128x128xf32> to vector<1x128x128xf32>
    %85 = vector.shape_cast %84 : vector<1x128x128xf32> to vector<128x128xf32>
    %cst_38 = arith.constant dense<0.000000e+00> : vector<2x128xf32>
    %86 = tpu.matmul %80, %85, %cst_38 {dimension_numbers = #tpu.dot_dimension_numbers<[1], [0], [0], [1], [0, 0, 1, 1], [], []>} : vector<2x128xf32>, vector<128x128xf32>, vector<2x128xf32> -> vector<2x128xf32>
    %c3_39 = arith.constant 3 : index
    %c0_40 = arith.constant 0 : index
    %c0_41 = arith.constant 0 : index
    %87 = vector.load %arg5[%c3_39, %c0_40, %c0_41] : memref<4x2x128xf32, #tpu.memory_space<vmem>>, vector<1x2x128xf32>
    %88 = vector.shape_cast %87 : vector<1x2x128xf32> to vector<2x128xf32>
    %89 = vector.shape_cast %86 : vector<2x128xf32> to vector<1x2x128xf32>
    tpu.vector_store %arg5[%c3_39, %c0_40, %c0_41], %89 {strides = array<i32>} : memref<4x2x128xf32, #tpu.memory_space<vmem>>, vector<1x2x128xf32>,
    return
  }
  func.func @transform_0(%arg0: i32) -> (i32, i32, i32) {
    %c0_i32 = arith.constant 0 : i32
    %c0_i32_0 = arith.constant 0 : i32
    %c0_i32_1 = arith.constant 0 : i32
    return %arg0, %c0_i32, %c0_i32_0 : i32, i32, i32
  }
  func.func @transform_1(%arg0: i32) -> (i32, i32) {
    %c0_i32 = arith.constant 0 : i32
    %c0_i32_0 = arith.constant 0 : i32
    %c0_i32_1 = arith.constant 0 : i32
    return %c0_i32, %c0_i32_0 : i32, i32
  }
  func.func @transform_2(%arg0: i32) -> (i32, i32) {
    %c0_i32 = arith.constant 0 : i32
    %c0_i32_0 = arith.constant 0 : i32
    %c0_i32_1 = arith.constant 0 : i32
    return %c0_i32, %c0_i32_0 : i32, i32
  }
  func.func @transform_3(%arg0: i32) -> (i32, i32) {
    %c0_i32 = arith.constant 0 : i32
    %c0_i32_0 = arith.constant 0 : i32
    %c0_i32_1 = arith.constant 0 : i32
    return %c0_i32, %c0_i32_0 : i32, i32
  }
  func.func @transform_4(%arg0: i32) -> (i32, i32, i32) {
    %c0_i32 = arith.constant 0 : i32
    %c0_i32_0 = arith.constant 0 : i32
    %c0_i32_1 = arith.constant 0 : i32
    return %arg0, %c0_i32, %c0_i32_0 : i32, i32, i32
  }
  func.func @transform_5(%arg0: i32) -> (i32, i32, i32) {
    %c0_i32 = arith.constant 0 : i32
    %c0_i32_0 = arith.constant 0 : i32
    %c0_i32_1 = arith.constant 0 : i32
    return %arg0, %c0_i32, %c0_i32_0 : i32, i32, i32
  }
}

</mosaic_0001>

<bundles_post_ra>
// kernel: tpu_custom_call.1
= control target key start
LH: loop header
LB: loop body
LE: loop exit
PB: predicated region body
PF: predicated region fallthrough
CT: control target
= control target key end

     0   :  { %11 = vsyncpa [#allocation3], 0  ;;  %s3756_s0 = inlined_call_operand.hbm [shape: f32[8,128,128], index: 0, kind: input, shape index: {}]   ;;  %s3757_s1 = inlined_call_operand.vmem [shape: f32[128,64], index: 1, kind: input, shape index: {}]   ;;  %s3758_s2 = inlined_call_operand.vmem [shape: f32[1,64], index: 2, kind: input, shape index: {}]   ;;  %s3759_s3 = inlined_call_operand.vmem [shape: f32[64,2], index: 3, kind: input, shape index: {}]   ;;  %s3760_s4 = inlined_call_operand.hbm [shape: f32[8,2,128], index: 4, kind: output, shape index: {0}]   ;;  %s3761_s5 = inlined_call_operand.hbm [shape: f32[8,2,128], index: 5, kind: output, shape index: {1}]  }
   0x1   :  { %13 = vsyncpa [#allocation3 + $0x1], 0 }
   0x2   :  { %14 = vsyncpa [#allocation4], 0 }
   0x3   :  { %16 = vsyncpa [#allocation4 + $0x1], 0 }
   0x4   :  { %17 = vsyncpa [#allocation7], 0 }
   0x5   :  { %19 = vsyncpa [#allocation7 + $0x1], 0  ;;  %s3109_s18 = smov 0   ;;  %s3111_s19 = smov 0  }
   0x6   :  { %s3113_s20 = smov 0   ;;  %s3115_s21 = smov 0  }
   0x7 LB: > { %s3130_s22 = sadd.s32 4294967295, %s3068_s21   ;;  %s1987_s23 = sadd.s32 4294967294, %s3068_s21   ;;  %s3068_s21 = sphi %s3115_s21, %s3776_s21   ;;  %s3064_s20 = sphi %s3113_s20, %s3775_s20   ;;  %s3060_s19 = sphi %s3111_s19, %s3774_s19   ;;  %s3056_s18 = sphi %s3109_s18, %s3773_s18  }
   0x8   : > { %s3134_s24 = sadd.s32 1, %s3068_s21   ;;  %s32_s25 = sadd.s32 1, %s3064_s20 }
   0x9   : > { %s29_s26 = ssub.s32 %s3068_s21, %s3134_s24  ;;  %p39_p0 = scmp.ne.s32.totalorder %s3064_s20, %s3060_s19 }
   0xa   : > { %p30_p1 = scmp.eq.s32.totalorder %s29_s26, 0  ;;  %p40_p2 = scmp.eq.s32.totalorder %s3068_s21, 0 }
   0xb   : > { %p45_p3 = scmp.ne.s32.totalorder %s3060_s19, %s3056_s18  ;;  %p46_p4 = scmp.eq.s32.totalorder %s3130_s22, 0 }
   0xc   : > { %s3146_s27 = scalar_select %p30_p1, %s3064_s20, %s32_s25  }
   0xd   : > { %p3148_p5 = por %p40_p2, %p39_p0  ;;  %p3152_p6 = por %p46_p4, %p45_p3 }
   0xe   : > { %p132_p7 = scmp.eq.s32.totalorder %s3130_s22, 1  ;;  %p138_p8 = scmp.eq.s32.totalorder %s1987_s23, 1 }
   0xf   : > { %s3765_s29 = scalar_select %p3152_p6, 1, 0 }
  0x10   : > { %p2698_p10 = scmp.lt.s32.totalorder %s3068_s21, 2  ;;  %p3159_p11 = por %p132_p7, %p39_p0 }
  0x11   : > { %p3163_p12 = por %p138_p8, %p45_p3  ;;  %s193_s7 = sand.u32 1, %s3064_s20  }
  0x12   : > { %s3766_s30 = scalar_select %p3159_p11, 1, 0 }
  0x13   : > { %s3767_s6 = scalar_select %p3163_p12, 1, 0 }
  0x14   : > { %s2078_s8 = sshll.u32 %s3068_s21, 13  ;;  %s1990_s9 = sshll.u32 %s193_s7, 9 }
  0x15   : > { %s3172_s12 = scalar_lea.hbm %s3756_s0, %s2078_s8  ;;  %s197_s13 = scalar_lea.vmem [#allocation2], %s1990_s9 }
  0x16   : > { %s205_s14 = sshll.u32 %s197_s13, 4  ;;  %p3176_p13 = pnand %p2698_p10, %p3148_p5  ;;  %s3180_s14 = int_to_ptr.vmem [resolvable:$true] %s205_s14 }
  0x17   : > { %s3182_s16 = scalar_lea.sflag [#allocation3], %s193_s7  ;;  %s2946_s17 = scalar_lea.hbm %s3172_s12, 8192 }
  0x18   : > { %p2947_p0 = scmp.ne.s32.totalorder %s3172_s12, %s2946_s17  ;;  %p2948_p1 = pneg %p3176_p13 }
  0x19   : > { %s2951_s26 = scalar_lea.hbm %s3756_s0, 16384  ;;  %p2952_p4 = scmp.lt.s32.totalorder %s3172_s12, %s3756_s0 }
  0x1a   : > { %p2949_p2 = pnand %p2948_p1, %p2947_p0  ;;  %p2953_p5 = scmp.lt.s32.totalorder %s2951_s26, %s2946_s17 }
  0x1c   : > { %p2950_p3 = pneg %p2949_p2  ;;  %p2954_p7 = por %p2953_p5, %p2952_p4 }
  0x1e   : > { %p2955_p8 = pnand %p2954_p7, %p2950_p3 }
  0x20   : > { %2958 = shalt.err (!%p2955_p8)
}
  0x21   : > { %s2959_s7 = scalar_lea.vmem %s3180_s14, 8192  ;;  %s3070_s9 = smov [#allocation2]  }
  0x22   : > { %p2960_p10 = scmp.ne.s32.totalorder %s3180_s14, %s2959_s7  ;;  %s2964_s10 = sshll.u32 %s3070_s9, 4  ;;  %s2965_s10 = int_to_ptr.vmem [resolvable:$false] %s2964_s10 }
  0x23   : > { %s2966_s11 = scalar_lea.vmem %s2965_s10, 16384  ;;  %p2967_p2 = scmp.lt.s32.totalorder %s3180_s14, %s2965_s10 }
  0x24   : > { %p2962_p9 = pnand %p2960_p10, %p2948_p1  ;;  %p2968_p12 = scmp.lt.s32.totalorder %s2966_s11, %s2959_s7 }
  0x26   : > { %p2963_p0 = pneg %p2962_p9  ;;  %p2969_p11 = por %p2968_p12, %p2967_p2 }
  0x28   : > { %p2970_p6 = pnand %p2969_p11, %p2963_p0 }
  0x2a   : > { %2973 = shalt.err (!%p2970_p6)
}
  0x2b   : > { %s3071_s13 = smov 128   ;;  %s3072_s17 = smov 8  }
  0x2c   : > { %2690 = dma.hbm_to_vmem [thread:$0]  (!%p3176_p13), %s3172_s12, 8192, %s3180_s14, %s3182_s16, %s3071_s13, %s3071_s13, %s3072_s17  }
  0x2d   : > { %p1994_p9 = scmp.ge.s32.totalorder %s3068_s21, 1  ;;  %p213_p1 = scmp.lt.s32.totalorder %s3068_s21, 3 }
  0x2f   : > { %p214_p3 = pnand %p1994_p9, %p213_p1 }
  0x30   : > { %s3206_s23 = sand.u32 (!%p214_p3), 1, %s3060_s19   ;;  %p3769_p6 = scmp.ne.s32.totalorder (!%p214_p3), %s3765_s29, 0 }
  0x31   : > { %217 = sbr.rel (%p214_p3) target bundleno = 1240 (0x4d8), region = 36  ;;  %s1995_s25 = sshll.u32 (!%p214_p3), %s3206_s23, 9 }
  0x32   : > { %s220_s26 = scalar_lea.sflag (!%p214_p3), [#allocation3], %s3206_s23  ;;  %s3210_s28 = scalar_lea.vmem (!%p214_p3), [#allocation2], %s1995_s25 }
  0x36   : > { %3043 = dma.done.wait (%p3769_p6), %s220_s26, 8192  }
  0x37   : > { %3045 = vsyncadd (%p3769_p6), %s220_s26, 4294959104  ;;  %v337_v0 = vld [vmem:[%s3757_s1 + $0x78] sm:$0xff]  ;;  %v336_v1 = vld [vmem:[%s3757_s1 + $0x70] sm:$0xff]  ;;  %vm802_vm0 = vcmask 523264   ;;  %vm1412_vm1 = vcmask 1041408   ;;  %vm3074_vm2 = vmmov 0  }
  0x38   : > { %2301 = vmatprep.subr.mxu0 %v337_v0  ;;  %v335_v2 = vld [vmem:[%s3757_s1 + $0x68] sm:$0xff]  ;;  %v334_v3 = vld [vmem:[%s3757_s1 + $0x60] sm:$0xff]  ;;  %v333_v5 = vld [vmem:[%s3757_s1 + $0x58] sm:$0xff]  ;;  %s1996_s10 = sshll.u32 %s3206_s23, 3  ;;  %s2079_s17 = sshll.u32 %s3130_s22, 7 }
  0x39   : > { %2302 = vmatpush3.msra.mxu0 %v337_v0  ;;  %v258_v4 = vld [vmem:[%s3210_s28] sm:$0xff]  ;;  %v332_v6 = vld [vmem:[%s3757_s1 + $0x50] sm:$0xff]  ;;  %v331_v7 = vld [vmem:[%s3757_s1 + $0x48] sm:$0xff]  ;;  %s3591_s11 = scalar_lea.vmem [#allocation6], %s1996_s10  ;;  %s3675_s12 = scalar_lea.hbm %s3761_s5, %s2079_s17 }
  0x3a   : > { %2303 = vmatprep.subr.mxu0 %v336_v1  ;;  %2333 = vmatprep.mubr.f32.mxu0 %v258_v4  ;;  %v330_v8 = vld [vmem:[%s3757_s1 + $0x40] sm:$0xff]  ;;  %v329_v9 = vld [vmem:[%s3757_s1 + $0x38] sm:$0xff]  ;;  %v328_v10 = vld [vmem:[%s3757_s1 + $0x30] sm:$0xff]  ;;  %s1882_s13 = sshll.u32 %s3591_s11, 4  ;;  %s1853_s14 = scalar_lea.sflag [#allocation7], %s3206_s23  ;;  %s3668_s13 = int_to_ptr.vmem [resolvable:$true] %s1882_s13 }
  0x3b   : > { %2304 = vmatpush3.msra.mxu0 %v336_v1  ;;  %v327_v11 = vld [vmem:[%s3757_s1 + $0x28] sm:$0xff]  ;;  %v326_v12 = vld [vmem:[%s3757_s1 + $0x20] sm:$0xff]  ;;  %v325_v13 = vld [vmem:[%s3757_s1 + $0x18] sm:$0xff]  ;;  %s2974_s15 = scalar_lea.vmem %s3668_s13, 128  ;;  %p3770_p12 = scmp.ne.s32.totalorder %s3766_s30, 0 }
  0x3c   : > { %2305 = vmatprep.subr.mxu0 %v335_v2  ;;  %v324_v14 = vld [vmem:[%s3757_s1 + $0x10] sm:$0xff]  ;;  %v323_v15 = vld [vmem:[%s3757_s1 + $0x8] sm:$0xff]  ;;  %v322_v16 = vld [vmem:[%s3757_s1] sm:$0xff]  ;;  %p2975_p11 = scmp.ne.s32.totalorder %s3668_s13, %s2974_s15 }
  0x3d   : > { %2306 = vmatpush3.msra.mxu0 %v335_v2  ;;  %v259_v17 = vld [vmem:[%s3210_s28 + $0x8] sm:$0xff]  ;;  %v260_v18 = vld [vmem:[%s3210_s28 + $0x10] sm:$0xff]  ;;  %v261_v19 = vld [vmem:[%s3210_s28 + $0x18] sm:$0xff] }
  0x3e   : > { %2307 = vmatprep.subr.mxu0 %v334_v3  ;;  %v262_v20 = vld [vmem:[%s3210_s28 + $0x20] sm:$0xff]  ;;  %v263_v21 = vld [vmem:[%s3210_s28 + $0x28] sm:$0xff]  ;;  %v264_v22 = vld [vmem:[%s3210_s28 + $0x30] sm:$0xff]  ;;  %p2976_p13 = pnand %p2975_p11, %p3770_p12 }
  0x3f   : > { %2308 = vmatpush3.msra.mxu0 %v334_v3  ;;  %v265_v23 = vld [vmem:[%s3210_s28 + $0x38] sm:$0xff]  ;;  %v266_v24 = vld [vmem:[%s3210_s28 + $0x40] sm:$0xff]  ;;  %v267_v25 = vld [vmem:[%s3210_s28 + $0x48] sm:$0xff] }
  0x40   : > { %2309 = vmatprep.subr.mxu0 %v333_v5  ;;  %v268_v26 = vld [vmem:[%s3210_s28 + $0x50] sm:$0xff]  ;;  %v269_v27 = vld [vmem:[%s3210_s28 + $0x58] sm:$0xff]  ;;  %v270_v28 = vld [vmem:[%s3210_s28 + $0x60] sm:$0xff]  ;;  %p2977_p4 = pneg %p2976_p13 }
  0x41   : > { %2310 = vmatpush3.msra.mxu0 %v333_v5  ;;  %v271_v29 = vld [vmem:[%s3210_s28 + $0x68] sm:$0xff]  ;;  %v272_v30 = vld [vmem:[%s3210_s28 + $0x70] sm:$0xff]  ;;  %v273_v31 = vld [vmem:[%s3210_s28 + $0x78] sm:$0xff] }
  0x42   : > { %2311 = vmatprep.subr.mxu0 %v332_v6  ;;  %v274_v32 = vld [vmem:[%s3210_s28 + $0x80] sm:$0xff]  ;;  %v275_v33 = vld [vmem:[%s3210_s28 + $0x88] sm:$0xff]  ;;  %v276_v34 = vld [vmem:[%s3210_s28 + $0x90] sm:$0xff] }
  0x43   : > { %2312 = vmatpush3.msra.mxu0 %v332_v6  ;;  %v277_v35 = vld [vmem:[%s3210_s28 + $0x98] sm:$0xff]  ;;  %v278_v36 = vld [vmem:[%s3210_s28 + $0xa0] sm:$0xff]  ;;  %v279_v37 = vld [vmem:[%s3210_s28 + $0xa8] sm:$0xff] }
  0x44   : > { %2313 = vmatprep.subr.mxu0 %v331_v7  ;;  %v280_v38 = vld [vmem:[%s3210_s28 + $0xb0] sm:$0xff]  ;;  %v281_v39 = vld [vmem:[%s3210_s28 + $0xb8] sm:$0xff]  ;;  %v282_v40 = vld [vmem:[%s3210_s28 + $0xc0] sm:$0xff] }
  0x45   : > { %2314 = vmatpush3.msra.mxu0 %v331_v7  ;;  %v283_v41 = vld [vmem:[%s3210_s28 + $0xc8] sm:$0xff]  ;;  %v284_v42 = vld [vmem:[%s3210_s28 + $0xd0] sm:$0xff]  ;;  %v285_v43 = vld [vmem:[%s3210_s28 + $0xd8] sm:$0xff] }
  0x46   : > { %2315 = vmatprep.subr.mxu0 %v330_v8  ;;  %v286_v44 = vld [vmem:[%s3210_s28 + $0xe0] sm:$0xff]  ;;  %v287_v45 = vld [vmem:[%s3210_s28 + $0xe8] sm:$0xff]  ;;  %v288_v46 = vld [vmem:[%s3210_s28 + $0xf0] sm:$0xff] }
  0x47   : > { %2316 = vmatpush3.msra.mxu0 %v330_v8  ;;  %v289_v47 = vld [vmem:[%s3210_s28 + $0xf8] sm:$0xff]  ;;  %v290_v48 = vld [vmem:[%s3210_s28 + $0x100] sm:$0xff]  ;;  %v291_v49 = vld [vmem:[%s3210_s28 + $0x108] sm:$0xff] }
  0x48   : > { %2317 = vmatprep.subr.mxu0 %v329_v9  ;;  %v292_v50 = vld [vmem:[%s3210_s28 + $0x110] sm:$0xff]  ;;  %v293_v51 = vld [vmem:[%s3210_s28 + $0x118] sm:$0xff]  ;;  %v294_v52 = vld [vmem:[%s3210_s28 + $0x120] sm:$0xff] }
  0x49   : > { %2318 = vmatpush3.msra.mxu0 %v329_v9  ;;  %v801_v53 = vld [vmem:[%s3759_s3 + $0x38] sm:$0xff]  ;;  %v295_v54 = vld [vmem:[%s3210_s28 + $0x128] sm:$0xff]  ;;  %v800_v55 = vld [vmem:[%s3759_s3 + $0x30] sm:$0xff] }
  0x4a   : > { %2319 = vmatprep.subr.mxu0 %v328_v10  ;;  %2429 = vmatprep.subr.mxu1 %v801_v53  ;;  %v296_v56 = vld [vmem:[%s3210_s28 + $0x130] sm:$0xff]  ;;  %v799_v57 = vld [vmem:[%s3759_s3 + $0x28] sm:$0xff]  ;;  %v297_v58 = vld [vmem:[%s3210_s28 + $0x138] sm:$0xff] }
  0x4b   : > { %2320 = vmatpush3.msra.mxu0 %v328_v10  ;;  %2430 = vmatpush3.msra.mxu1 %v801_v53  ;;  %v798_v59 = vld [vmem:[%s3759_s3 + $0x20] sm:$0xff]  ;;  %v797_v61 = vld [vmem:[%s3759_s3 + $0x18] sm:$0xff]  ;;  %v299_v62 = vld [vmem:[%s3210_s28 + $0x148] sm:$0xff] }
  0x4c   : > { %2321 = vmatprep.subr.mxu0 %v327_v11  ;;  %2431 = vmatprep.subr.mxu1 %v800_v55  ;;  %v298_v60 = vld [vmem:[%s3210_s28 + $0x140] sm:$0xff]  ;;  %v796_v63 = vld [vmem:[%s3759_s3 + $0x10] sm:$0xff]  ;;  %v795_v1 = vld [vmem:[%s3759_s3 + $0x8] sm:$0xff] }
  0x4d   : > { %2322 = vmatpush3.msra.mxu0 %v327_v11  ;;  %2432 = vmatpush3.msra.mxu1 %v800_v55  ;;  %v300_v0 = vld [vmem:[%s3210_s28 + $0x150] sm:$0xff]  ;;  %v301_v2 = vld [vmem:[%s3210_s28 + $0x158] sm:$0xff]  ;;  %v794_v3 = vld [vmem:[%s3759_s3] sm:$0xff] }
  0x4e   : > { %2323 = vmatprep.subr.mxu0 %v326_v12  ;;  %2433 = vmatprep.subr.mxu1 %v799_v57  ;;  %v302_v4 = vld [vmem:[%s3210_s28 + $0x160] sm:$0xff]  ;;  %v303_v5 = vld [vmem:[%s3210_s28 + $0x168] sm:$0xff]  ;;  %v304_v6 = vld [vmem:[%s3210_s28 + $0x170] sm:$0xff] }
  0x4f   : > { %2324 = vmatpush3.msra.mxu0 %v326_v12  ;;  %2434 = vmatpush3.msra.mxu1 %v799_v57  ;;  %v305_v7 = vld [vmem:[%s3210_s28 + $0x178] sm:$0xff]  ;;  %v306_v8 = vld [vmem:[%s3210_s28 + $0x180] sm:$0xff]  ;;  %v307_v9 = vld [vmem:[%s3210_s28 + $0x188] sm:$0xff] }
  0x50   : > { %2325 = vmatprep.subr.mxu0 %v325_v13  ;;  %2435 = vmatprep.subr.mxu1 %v798_v59  ;;  %v308_v10 = vld [vmem:[%s3210_s28 + $0x190] sm:$0xff]  ;;  %v309_v11 = vld [vmem:[%s3210_s28 + $0x198] sm:$0xff]  ;;  %v310_v12 = vld [vmem:[%s3210_s28 + $0x1a0] sm:$0xff] }
  0x51   : > { %2326 = vmatpush3.msra.mxu0 %v325_v13  ;;  %2436 = vmatpush3.msra.mxu1 %v798_v59  ;;  %v311_v13 = vld [vmem:[%s3210_s28 + $0x1a8] sm:$0xff] }
  0x52   : > { %2327 = vmatprep.subr.mxu0 %v324_v14  ;;  %2437 = vmatprep.subr.mxu1 %v797_v61 }
  0x53   : > { %2328 = vmatpush3.msra.mxu0 %v324_v14  ;;  %2438 = vmatpush3.msra.mxu1 %v797_v61  ;;  %v312_v14 = vld [vmem:[%s3210_s28 + $0x1b0] sm:$0xff] }
  0x54   : > { %2329 = vmatprep.subr.mxu0 %v323_v15  ;;  %2439 = vmatprep.subr.mxu1 %v796_v63 }
  0x55   : > { %2330 = vmatpush3.msra.mxu0 %v323_v15  ;;  %2440 = vmatpush3.msra.mxu1 %v796_v63  ;;  %v313_v15 = vld [vmem:[%s3210_s28 + $0x1b8] sm:$0xff] }
  0x56   : > { %2331 = vmatprep.subr.mxu0 %v322_v16  ;;  %2441 = vmatprep.subr.mxu1 %v795_v1 }
  0x57   : > { %2332 = vmatpush3.msra.mxu0 %v322_v16  ;;  %2442 = vmatpush3.msra.mxu1 %v795_v1  ;;  %v314_v16 = vld [vmem:[%s3210_s28 + $0x1c0] sm:$0xff] }
  0x58   : > { %2334 = vmatmul.mubr.f32.vlgmr.msra.gmra.mxu0 %v259_v17  ;;  %2443 = vmatprep.subr.mxu1 %v794_v3  ;;  %v315_v17 = vld [vmem:[%s3210_s28 + $0x1c8] sm:$0xff] }
  0x59   : > { %2336 = vmatprep.mubr.f32.mxu0 %v260_v18  ;;  %2444 = vmatpush3.msra.mxu1 %v794_v3  ;;  %v316_v18 = vld [vmem:[%s3210_s28 + $0x1d0] sm:$0xff] }
  0x5c   : > { %2337 = vmatmul.mubr.f32.gmra.mxu0 %v261_v19  ;;  %v317_v19 = vld [vmem:[%s3210_s28 + $0x1d8] sm:$0xff] }
  0x5d   : > { %2339 = vmatprep.mubr.f32.mxu0 %v262_v20  ;;  %v318_v20 = vld [vmem:[%s3210_s28 + $0x1e0] sm:$0xff] }
  0x60   : > { %2340 = vmatmul.mubr.f32.gmra.mxu0 %v263_v21  ;;  %v319_v21 = vld [vmem:[%s3210_s28 + $0x1e8] sm:$0xff] }
  0x61   : > { %2342 = vmatprep.mubr.f32.mxu0 %v264_v22  ;;  %v320_v22 = vld [vmem:[%s3210_s28 + $0x1f0] sm:$0xff] }
  0x64   : > { %2343 = vmatmul.mubr.f32.gmra.mxu0 %v265_v23  ;;  %v321_v23 = vld [vmem:[%s3210_s28 + $0x1f8] sm:$0xff] }
  0x65   : > { %2345 = vmatprep.mubr.f32.mxu0 %v266_v24  ;;  %v3355_v24 = vld [vmem:[%s3758_s2] ss:$0 sm:$0xff] }
  0x68   : > { %2346 = vmatmul.mubr.f32.gmra.mxu0 %v267_v25 }
  0x69   : > { %2348 = vmatprep.mubr.f32.mxu0 %v268_v26 }
  0x6c   : > { %2349 = vmatmul.mubr.f32.gmra.mxu0 %v269_v27 }
  0x6d   : > { %2351 = vmatprep.mubr.f32.mxu0 %v270_v28 }
  0x70   : > { %2352 = vmatmul.mubr.f32.gmra.mxu0 %v271_v29 }
  0x71   : > { %2354 = vmatprep.mubr.f32.mxu0 %v272_v30 }
  0x74   : > { %2355 = vmatmul.mubr.f32.gmra.mxu0 %v273_v31 }
  0x75   : > { %2357 = vmatprep.mubr.f32.mxu0 %v274_v32 }
  0x78   : > { %2358 = vmatmul.mubr.f32.gmra.mxu0 %v275_v33 }
  0x79   : > { %2360 = vmatprep.mubr.f32.mxu0 %v276_v34 }
  0x7c   : > { %2361 = vmatmul.mubr.f32.gmra.mxu0 %v277_v35 }
  0x7d   : > { %2363 = vmatprep.mubr.f32.mxu0 %v278_v36 }
  0x80   : > { %2364 = vmatmul.mubr.f32.gmra.mxu0 %v279_v37 }
  0x81   : > { %2366 = vmatprep.mubr.f32.mxu0 %v280_v38 }
  0x84   : > { %2367 = vmatmul.mubr.f32.gmra.mxu0 %v281_v39 }
  0x85   : > { %2369 = vmatprep.mubr.f32.mxu0 %v282_v40 }
  0x88   : > { %2370 = vmatmul.mubr.f32.gmra.mxu0 %v283_v41 }
  0x89   : > { %2372 = vmatprep.mubr.f32.mxu0 %v284_v42 }
  0x8c   : > { %2373 = vmatmul.mubr.f32.gmra.mxu0 %v285_v43 }
  0x8d   : > { %2375 = vmatprep.mubr.f32.mxu0 %v286_v44 }
  0x90   : > { %2376 = vmatmul.mubr.f32.gmra.mxu0 %v287_v45 }
  0x91   : > { %2378 = vmatprep.mubr.f32.mxu0 %v288_v46 }
  0x94   : > { %2379 = vmatmul.mubr.f32.gmra.mxu0 %v289_v47 }
  0x95   : > { %2381 = vmatprep.mubr.f32.mxu0 %v290_v48 }
  0x98   : > { %2382 = vmatmul.mubr.f32.gmra.mxu0 %v291_v49 }
  0x99   : > { %2384 = vmatprep.mubr.f32.mxu0 %v292_v50 }
  0x9c   : > { %2385 = vmatmul.mubr.f32.gmra.mxu0 %v293_v51 }
  0x9d   : > { %2387 = vmatprep.mubr.f32.mxu0 %v294_v52 }
  0xa0   : > { %2388 = vmatmul.mubr.f32.gmra.mxu0 %v295_v54 }
  0xa1   : > { %2390 = vmatprep.mubr.f32.mxu0 %v296_v56 }
  0xa4   : > { %2391 = vmatmul.mubr.f32.gmra.mxu0 %v297_v58 }
  0xa5   : > { %2393 = vmatprep.mubr.f32.mxu0 %v298_v60 }
  0xa8   : > { %2394 = vmatmul.mubr.f32.gmra.mxu0 %v299_v62 }
  0xa9   : > { %2396 = vmatprep.mubr.f32.mxu0 %v300_v0 }
  0xac   : > { %2397 = vmatmul.mubr.f32.gmra.mxu0 %v301_v2 }
  0xad   : > { %2399 = vmatprep.mubr.f32.mxu0 %v302_v4 }
  0xb0   : > { %2400 = vmatmul.mubr.f32.gmra.mxu0 %v303_v5 }
  0xb1   : > { %2402 = vmatprep.mubr.f32.mxu0 %v304_v6 }
  0xb4   : > { %2403 = vmatmul.mubr.f32.gmra.mxu0 %v305_v7 }
  0xb5   : > { %2405 = vmatprep.mubr.f32.mxu0 %v306_v8 }
  0xb8   : > { %2406 = vmatmul.mubr.f32.gmra.mxu0 %v307_v9 }
  0xb9   : > { %2408 = vmatprep.mubr.f32.mxu0 %v308_v10 }
  0xbc   : > { %2409 = vmatmul.mubr.f32.gmra.mxu0 %v309_v11 }
  0xbd   : > { %2411 = vmatprep.mubr.f32.mxu0 %v310_v12 }
  0xc0   : > { %2412 = vmatmul.mubr.f32.gmra.mxu0 %v311_v13 }
  0xc1   : > { %2414 = vmatprep.mubr.f32.mxu0 %v312_v14 }
  0xc4   : > { %2415 = vmatmul.mubr.f32.gmra.mxu0 %v313_v15 }
  0xc5   : > { %2417 = vmatprep.mubr.f32.mxu0 %v314_v16 }
  0xc8   : > { %2418 = vmatmul.mubr.f32.gmra.mxu0 %v315_v17 }
  0xc9   : > { %2420 = vmatprep.mubr.f32.mxu0 %v316_v18 }
  0xcc   : > { %2421 = vmatmul.mubr.f32.gmra.mxu0 %v317_v19 }
  0xcd   : > { %2423 = vmatprep.mubr.f32.mxu0 %v318_v20 }
  0xd0   : > { %2424 = vmatmul.mubr.f32.gmra.mxu0 %v319_v21 }
  0xd1   : > { %2426 = vmatprep.mubr.f32.mxu0 %v320_v22 }
  0xd4   : > { %2427 = vmatmul.mubr.f32.gmra.mxu0 %v321_v23 }
 0x118   : > { %v2335_v25 = vpop.f32.mrf.mxu0 }
 0x119   : > { %v417_v26 = vadd.f32 %v2335_v25, %v3355_v24 }
 0x11a   : > { %v411_v27 = vpop.f32.mrf.mxu0 }
 0x11b   : > { %v412_v28 = vadd.f32 %v3355_v24, %v411_v27 }
 0x11c   : > { %v2338_v29 = vpop.f32.mrf.mxu0 }
 0x11d   : > { %2738 = vtanh.f32 %v412_v28  ;;  %v427_v30 = vadd.f32 %v2338_v29, %v3355_v24 }
 0x11e   : > { %2740 = vtanh.f32 %v417_v26  ;;  %v421_v31 = vpop.f32.mrf.mxu0 }
 0x11f   : > { %v422_v32 = vadd.f32 %v3355_v24, %v421_v31 }
 0x120   : > { %v2341_v33 = vpop.f32.mrf.mxu0 }
 0x121   : > { %2742 = vtanh.f32 %v422_v32  ;;  %v437_v34 = vadd.f32 %v2341_v33, %v3355_v24 }
 0x122   : > { %2744 = vtanh.f32 %v427_v30  ;;  %v431_v35 = vpop.f32.mrf.mxu0 }
 0x123   : > { %v432_v36 = vadd.f32 %v3355_v24, %v431_v35 }
 0x124   : > { %v2344_v37 = vpop.f32.mrf.mxu0 }
 0x125   : > { %2746 = vtanh.f32 %v432_v36  ;;  %v447_v38 = vadd.f32 %v2344_v37, %v3355_v24 }
 0x126   : > { %2748 = vtanh.f32 %v437_v34  ;;  %v441_v39 = vpop.f32.mrf.mxu0 }
 0x127   : > { %v442_v40 = vadd.f32 %v3355_v24, %v441_v39 }
 0x128   : > { %v2347_v41 = vpop.f32.mrf.mxu0 }
 0x129   : > { %2750 = vtanh.f32 %v442_v40  ;;  %v457_v43 = vadd.f32 %v2347_v41, %v3355_v24 }
 0x12a   : > { %v2739_v42 = vpop.eup %2738  ;;  %2752 = vtanh.f32 %v447_v38  ;;  %v451_v44 = vpop.f32.mrf.mxu0 }
 0x12b   : > { %v2741_v45 = vpop.eup %2740  ;;  %v452_v46 = vadd.f32 %v3355_v24, %v451_v44  ;;  %2445 = vmatprep.mubr.msk.f32.mxu1 %vm802_vm0, %v2739_v42 }
 0x12c   : > { %v2350_v47 = vpop.f32.mrf.mxu0  ;;  %2446 = vmatmul.mubr.msk.f32.vlgmr.msra.gmra.mxu1 %vm802_vm0, %v2741_v45 }
 0x12d   : > { %2754 = vtanh.f32 %v452_v46  ;;  %v467_v49 = vadd.f32 %v2350_v47, %v3355_v24 }
 0x12e   : > { %v2743_v48 = vpop.eup %2742  ;;  %2756 = vtanh.f32 %v457_v43  ;;  %v461_v50 = vpop.f32.mrf.mxu0 }
 0x12f   : > { %v2745_v51 = vpop.eup %2744  ;;  %v462_v52 = vadd.f32 %v3355_v24, %v461_v50  ;;  %2448 = vmatprep.mubr.msk.f32.mxu1 %vm802_vm0, %v2743_v48 }
 0x130   : > { %v2353_v53 = vpop.f32.mrf.mxu0  ;;  %2449 = vmatmul.mubr.msk.f32.gmra.mxu1 %vm802_vm0, %v2745_v51 }
 0x131   : > { %2758 = vtanh.f32 %v462_v52  ;;  %v477_v55 = vadd.f32 %v2353_v53, %v3355_v24 }
 0x132   : > { %v2747_v54 = vpop.eup %2746  ;;  %2760 = vtanh.f32 %v467_v49  ;;  %v471_v56 = vpop.f32.mrf.mxu0 }
 0x133   : > { %v2749_v57 = vpop.eup %2748  ;;  %v472_v58 = vadd.f32 %v3355_v24, %v471_v56  ;;  %2451 = vmatprep.mubr.msk.f32.mxu1 %vm802_vm0, %v2747_v54 }
 0x134   : > { %v2356_v59 = vpop.f32.mrf.mxu0  ;;  %2452 = vmatmul.mubr.msk.f32.gmra.mxu1 %vm802_vm0, %v2749_v57 }
 0x135   : > { %2762 = vtanh.f32 %v472_v58  ;;  %v487_v61 = vadd.f32 %v2356_v59, %v3355_v24 }
 0x136   : > { %v2751_v60 = vpop.eup %2750  ;;  %2764 = vtanh.f32 %v477_v55  ;;  %v481_v62 = vpop.f32.mrf.mxu0 }
 0x137   : > { %v2753_v63 = vpop.eup %2752  ;;  %v482_v0 = vadd.f32 %v3355_v24, %v481_v62  ;;  %2454 = vmatprep.mubr.msk.f32.mxu1 %vm802_vm0, %v2751_v60 }
 0x138   : > { %v2359_v1 = vpop.f32.mrf.mxu0  ;;  %2455 = vmatmul.mubr.msk.f32.gmra.mxu1 %vm802_vm0, %v2753_v63 }
 0x139   : > { %2766 = vtanh.f32 %v482_v0  ;;  %v497_v3 = vadd.f32 %v2359_v1, %v3355_v24 }
 0x13a   : > { %v2755_v2 = vpop.eup %2754  ;;  %2768 = vtanh.f32 %v487_v61  ;;  %v491_v4 = vpop.f32.mrf.mxu0 }
 0x13b   : > { %v2757_v5 = vpop.eup %2756  ;;  %v492_v6 = vadd.f32 %v3355_v24, %v491_v4  ;;  %2457 = vmatprep.mubr.msk.f32.mxu1 %vm802_vm0, %v2755_v2 }
 0x13c   : > { %v2362_v7 = vpop.f32.mrf.mxu0  ;;  %2458 = vmatmul.mubr.msk.f32.gmra.mxu1 %vm802_vm0, %v2757_v5 }
 0x13d   : > { %2770 = vtanh.f32 %v492_v6  ;;  %v507_v9 = vadd.f32 %v2362_v7, %v3355_v24 }
 0x13e   : > { %v2759_v8 = vpop.eup %2758  ;;  %2772 = vtanh.f32 %v497_v3  ;;  %v501_v10 = vpop.f32.mrf.mxu0 }
 0x13f   : > { %v2761_v11 = vpop.eup %2760  ;;  %v502_v12 = vadd.f32 %v3355_v24, %v501_v10  ;;  %2460 = vmatprep.mubr.msk.f32.mxu1 %vm802_vm0, %v2759_v8 }
 0x140   : > { %v2365_v13 = vpop.f32.mrf.mxu0  ;;  %2461 = vmatmul.mubr.msk.f32.gmra.mxu1 %vm802_vm0, %v2761_v11 }
 0x141   : > { %2774 = vtanh.f32 %v502_v12  ;;  %v517_v15 = vadd.f32 %v2365_v13, %v3355_v24 }
 0x142   : > { %v2763_v14 = vpop.eup %2762  ;;  %2776 = vtanh.f32 %v507_v9  ;;  %v511_v16 = vpop.f32.mrf.mxu0 }
 0x143   : > { %v2765_v17 = vpop.eup %2764  ;;  %v512_v18 = vadd.f32 %v3355_v24, %v511_v16  ;;  %2463 = vmatprep.mubr.msk.f32.mxu1 %vm802_vm0, %v2763_v14 }
 0x144   : > { %v2368_v19 = vpop.f32.mrf.mxu0  ;;  %2464 = vmatmul.mubr.msk.f32.gmra.mxu1 %vm802_vm0, %v2765_v17 }
 0x145   : > { %2778 = vtanh.f32 %v512_v18  ;;  %v527_v21 = vadd.f32 %v2368_v19, %v3355_v24 }
 0x146   : > { %v2767_v20 = vpop.eup %2766  ;;  %2780 = vtanh.f32 %v517_v15  ;;  %v521_v22 = vpop.f32.mrf.mxu0 }
 0x147   : > { %v2769_v23 = vpop.eup %2768  ;;  %v522_v25 = vadd.f32 %v3355_v24, %v521_v22  ;;  %2466 = vmatprep.mubr.msk.f32.mxu1 %vm802_vm0, %v2767_v20 }
 0x148   : > { %v2371_v26 = vpop.f32.mrf.mxu0  ;;  %2467 = vmatmul.mubr.msk.f32.gmra.mxu1 %vm802_vm0, %v2769_v23 }
 0x149   : > { %2782 = vtanh.f32 %v522_v25  ;;  %v537_v28 = vadd.f32 %v2371_v26, %v3355_v24 }
 0x14a   : > { %v2771_v27 = vpop.eup %2770  ;;  %2784 = vtanh.f32 %v527_v21  ;;  %v531_v29 = vpop.f32.mrf.mxu0 }
 0x14b   : > { %v2773_v30 = vpop.eup %2772  ;;  %v532_v31 = vadd.f32 %v3355_v24, %v531_v29  ;;  %2469 = vmatprep.mubr.msk.f32.mxu1 %vm802_vm0, %v2771_v27 }
 0x14c   : > { %v2374_v32 = vpop.f32.mrf.mxu0  ;;  %2470 = vmatmul.mubr.msk.f32.gmra.mxu1 %vm802_vm0, %v2773_v30 }
 0x14d   : > { %2786 = vtanh.f32 %v532_v31  ;;  %v547_v34 = vadd.f32 %v2374_v32, %v3355_v24 }
 0x14e   : > { %v2775_v33 = vpop.eup %2774  ;;  %2788 = vtanh.f32 %v537_v28  ;;  %v541_v35 = vpop.f32.mrf.mxu0 }
 0x14f   : > { %v2777_v36 = vpop.eup %2776  ;;  %v542_v37 = vadd.f32 %v3355_v24, %v541_v35  ;;  %2472 = vmatprep.mubr.msk.f32.mxu1 %vm802_vm0, %v2775_v33 }
 0x150   : > { %v2377_v38 = vpop.f32.mrf.mxu0  ;;  %2473 = vmatmul.mubr.msk.f32.gmra.mxu1 %vm802_vm0, %v2777_v36 }
 0x151   : > { %2790 = vtanh.f32 %v542_v37  ;;  %v557_v40 = vadd.f32 %v2377_v38, %v3355_v24 }
 0x152   : > { %v2779_v39 = vpop.eup %2778  ;;  %2792 = vtanh.f32 %v547_v34  ;;  %v551_v41 = vpop.f32.mrf.mxu0 }
 0x153   : > { %v2781_v42 = vpop.eup %2780  ;;  %v552_v43 = vadd.f32 %v3355_v24, %v551_v41  ;;  %2475 = vmatprep.mubr.msk.f32.mxu1 %vm802_vm0, %v2779_v39 }
 0x154   : > { %v2380_v44 = vpop.f32.mrf.mxu0  ;;  %2476 = vmatmul.mubr.msk.f32.gmra.mxu1 %vm802_vm0, %v2781_v42 }
 0x155   : > { %2794 = vtanh.f32 %v552_v43  ;;  %v567_v46 = vadd.f32 %v2380_v44, %v3355_v24 }
 0x156   : > { %v2783_v45 = vpop.eup %2782  ;;  %2796 = vtanh.f32 %v557_v40  ;;  %v561_v47 = vpop.f32.mrf.mxu0 }
 0x157   : > { %v2785_v48 = vpop.eup %2784  ;;  %v562_v49 = vadd.f32 %v3355_v24, %v561_v47  ;;  %2478 = vmatprep.mubr.msk.f32.mxu1 %vm802_vm0, %v2783_v45 }
 0x158   : > { %v2383_v50 = vpop.f32.mrf.mxu0  ;;  %2479 = vmatmul.mubr.msk.f32.gmra.mxu1 %vm802_vm0, %v2785_v48 }
 0x159   : > { %2798 = vtanh.f32 %v562_v49  ;;  %v577_v52 = vadd.f32 %v2383_v50, %v3355_v24 }
 0x15a   : > { %v2787_v51 = vpop.eup %2786  ;;  %2800 = vtanh.f32 %v567_v46  ;;  %v571_v53 = vpop.f32.mrf.mxu0 }
 0x15b   : > { %v2789_v54 = vpop.eup %2788  ;;  %v572_v55 = vadd.f32 %v3355_v24, %v571_v53  ;;  %2481 = vmatprep.mubr.msk.f32.mxu1 %vm802_vm0, %v2787_v51 }
 0x15c   : > { %v2386_v56 = vpop.f32.mrf.mxu0  ;;  %2482 = vmatmul.mubr.msk.f32.gmra.mxu1 %vm802_vm0, %v2789_v54 }
 0x15d   : > { %2802 = vtanh.f32 %v572_v55  ;;  %v587_v58 = vadd.f32 %v2386_v56, %v3355_v24 }
 0x15e   : > { %v2791_v57 = vpop.eup %2790  ;;  %2804 = vtanh.f32 %v577_v52  ;;  %v581_v59 = vpop.f32.mrf.mxu0 }
 0x15f   : > { %v2793_v60 = vpop.eup %2792  ;;  %v582_v61 = vadd.f32 %v3355_v24, %v581_v59  ;;  %2484 = vmatprep.mubr.msk.f32.mxu1 %vm802_vm0, %v2791_v57 }
 0x160   : > { %v2389_v62 = vpop.f32.mrf.mxu0  ;;  %2485 = vmatmul.mubr.msk.f32.gmra.mxu1 %vm802_vm0, %v2793_v60 }
 0x161   : > { %2806 = vtanh.f32 %v582_v61  ;;  %v597_v0 = vadd.f32 %v2389_v62, %v3355_v24 }
 0x162   : > { %v2795_v63 = vpop.eup %2794  ;;  %2808 = vtanh.f32 %v587_v58  ;;  %v591_v1 = vpop.f32.mrf.mxu0 }
 0x163   : > { %v2797_v2 = vpop.eup %2796  ;;  %v592_v3 = vadd.f32 %v3355_v24, %v591_v1  ;;  %2487 = vmatprep.mubr.msk.f32.mxu1 %vm802_vm0, %v2795_v63 }
 0x164   : > { %v2392_v4 = vpop.f32.mrf.mxu0  ;;  %2488 = vmatmul.mubr.msk.f32.gmra.mxu1 %vm802_vm0, %v2797_v2 }
 0x165   : > { %2810 = vtanh.f32 %v592_v3  ;;  %v607_v6 = vadd.f32 %v2392_v4, %v3355_v24 }
 0x166   : > { %v2799_v5 = vpop.eup %2798  ;;  %2812 = vtanh.f32 %v597_v0  ;;  %v601_v7 = vpop.f32.mrf.mxu0 }
 0x167   : > { %v2801_v8 = vpop.eup %2800  ;;  %v602_v9 = vadd.f32 %v3355_v24, %v601_v7  ;;  %2490 = vmatprep.mubr.msk.f32.mxu1 %vm802_vm0, %v2799_v5 }
 0x168   : > { %v2395_v10 = vpop.f32.mrf.mxu0  ;;  %2491 = vmatmul.mubr.msk.f32.gmra.mxu1 %vm802_vm0, %v2801_v8 }
 0x169   : > { %2814 = vtanh.f32 %v602_v9  ;;  %v617_v12 = vadd.f32 %v2395_v10, %v3355_v24 }
 0x16a   : > { %v2803_v11 = vpop.eup %2802  ;;  %2816 = vtanh.f32 %v607_v6  ;;  %v611_v13 = vpop.f32.mrf.mxu0 }
 0x16b   : > { %v2805_v14 = vpop.eup %2804  ;;  %v612_v15 = vadd.f32 %v3355_v24, %v611_v13  ;;  %2493 = vmatprep.mubr.msk.f32.mxu1 %vm802_vm0, %v2803_v11 }
 0x16c   : > { %v2398_v16 = vpop.f32.mrf.mxu0  ;;  %2494 = vmatmul.mubr.msk.f32.gmra.mxu1 %vm802_vm0, %v2805_v14 }
 0x16d   : > { %2818 = vtanh.f32 %v612_v15  ;;  %v627_v18 = vadd.f32 %v2398_v16, %v3355_v24 }
 0x16e   : > { %v2807_v17 = vpop.eup %2806  ;;  %2820 = vtanh.f32 %v617_v12  ;;  %v621_v19 = vpop.f32.mrf.mxu0 }
 0x16f   : > { %v2809_v20 = vpop.eup %2808  ;;  %v622_v21 = vadd.f32 %v3355_v24, %v621_v19  ;;  %2496 = vmatprep.mubr.msk.f32.mxu1 %vm802_vm0, %v2807_v17 }
 0x170   : > { %v2401_v22 = vpop.f32.mrf.mxu0  ;;  %2497 = vmatmul.mubr.msk.f32.gmra.mxu1 %vm802_vm0, %v2809_v20 }
 0x171   : > { %2822 = vtanh.f32 %v622_v21  ;;  %v637_v25 = vadd.f32 %v2401_v22, %v3355_v24 }
 0x172   : > { %v2811_v23 = vpop.eup %2810  ;;  %2824 = vtanh.f32 %v627_v18  ;;  %v631_v26 = vpop.f32.mrf.mxu0 }
 0x173   : > { %v2813_v27 = vpop.eup %2812  ;;  %v632_v28 = vadd.f32 %v3355_v24, %v631_v26  ;;  %2499 = vmatprep.mubr.msk.f32.mxu1 %vm802_vm0, %v2811_v23 }
 0x174   : > { %v2404_v29 = vpop.f32.mrf.mxu0  ;;  %2500 = vmatmul.mubr.msk.f32.gmra.mxu1 %vm802_vm0, %v2813_v27 }
 0x175   : > { %2826 = vtanh.f32 %v632_v28  ;;  %v647_v31 = vadd.f32 %v2404_v29, %v3355_v24 }
 0x176   : > { %v2815_v30 = vpop.eup %2814  ;;  %2828 = vtanh.f32 %v637_v25  ;;  %v641_v32 = vpop.f32.mrf.mxu0 }
 0x177   : > { %v2817_v33 = vpop.eup %2816  ;;  %v642_v34 = vadd.f32 %v3355_v24, %v641_v32  ;;  %2502 = vmatprep.mubr.msk.f32.mxu1 %vm802_vm0, %v2815_v30 }
 0x178   : > { %v2407_v35 = vpop.f32.mrf.mxu0  ;;  %2503 = vmatmul.mubr.msk.f32.gmra.mxu1 %vm802_vm0, %v2817_v33 }
 0x179   : > { %2830 = vtanh.f32 %v642_v34  ;;  %v657_v37 = vadd.f32 %v2407_v35, %v3355_v24 }
 0x17a   : > { %v2819_v36 = vpop.eup %2818  ;;  %2832 = vtanh.f32 %v647_v31  ;;  %v651_v38 = vpop.f32.mrf.mxu0 }
 0x17b   : > { %v2821_v39 = vpop.eup %2820  ;;  %v652_v40 = vadd.f32 %v3355_v24, %v651_v38  ;;  %2505 = vmatprep.mubr.msk.f32.mxu1 %vm802_vm0, %v2819_v36 }
 0x17c   : > { %v2410_v41 = vpop.f32.mrf.mxu0  ;;  %2506 = vmatmul.mubr.msk.f32.gmra.mxu1 %vm802_vm0, %v2821_v39 }
 0x17d   : > { %2834 = vtanh.f32 %v652_v40  ;;  %v667_v42 = vadd.f32 %v2410_v41, %v3355_v24 }
 0x17e   : > { %v2823_v43 = vpop.eup %2822  ;;  %2836 = vtanh.f32 %v657_v37  ;;  %v661_v44 = vpop.f32.mrf.mxu0 }
 0x17f   : > { %v2825_v45 = vpop.eup %2824  ;;  %v662_v46 = vadd.f32 %v3355_v24, %v661_v44  ;;  %2508 = vmatprep.mubr.msk.f32.mxu1 %vm802_vm0, %v2823_v43  ;;  %2838 = vtanh.f32 %v667_v42 }
 0x180   : > { %2509 = vmatmul.mubr.msk.f32.gmra.mxu1 %vm802_vm0, %v2825_v45  ;;  %v2413_v47 = vpop.f32.mrf.mxu0 }
 0x181   : > { %2840 = vtanh.f32 %v662_v46  ;;  %v677_v48 = vadd.f32 %v2413_v47, %v3355_v24 }
 0x182   : > { %v2827_v49 = vpop.eup %2826  ;;  %v671_v50 = vpop.f32.mrf.mxu0 }
 0x183   : > { %v2829_v51 = vpop.eup %2828  ;;  %2511 = vmatprep.mubr.msk.f32.mxu1 %vm802_vm0, %v2827_v49  ;;  %v672_v52 = vadd.f32 %v3355_v24, %v671_v50  ;;  %2842 = vtanh.f32 %v677_v48 }
 0x184   : > { %2512 = vmatmul.mubr.msk.f32.gmra.mxu1 %vm802_vm0, %v2829_v51  ;;  %v2416_v53 = vpop.f32.mrf.mxu0 }
 0x185   : > { %2844 = vtanh.f32 %v672_v52  ;;  %v687_v54 = vadd.f32 %v2416_v53, %v3355_v24 }
 0x186   : > { %v2831_v55 = vpop.eup %2830  ;;  %v681_v56 = vpop.f32.mrf.mxu0 }
 0x187   : > { %v2833_v57 = vpop.eup %2832  ;;  %2514 = vmatprep.mubr.msk.f32.mxu1 %vm802_vm0, %v2831_v55  ;;  %v682_v58 = vadd.f32 %v3355_v24, %v681_v56  ;;  %2846 = vtanh.f32 %v687_v54 }
 0x188   : > { %2515 = vmatmul.mubr.msk.f32.gmra.mxu1 %vm802_vm0, %v2833_v57  ;;  %v2419_v59 = vpop.f32.mrf.mxu0 }
 0x189   : > { %2848 = vtanh.f32 %v682_v58  ;;  %v697_v60 = vadd.f32 %v2419_v59, %v3355_v24 }
 0x18a   : > { %v2835_v61 = vpop.eup %2834  ;;  %v691_v62 = vpop.f32.mrf.mxu0 }
 0x18b   : > { %v2837_v63 = vpop.eup %2836  ;;  %2517 = vmatprep.mubr.msk.f32.mxu1 %vm802_vm0, %v2835_v61  ;;  %v692_v0 = vadd.f32 %v3355_v24, %v691_v62  ;;  %2850 = vtanh.f32 %v697_v60 }
 0x18c   : > { %2518 = vmatmul.mubr.msk.f32.gmra.mxu1 %vm802_vm0, %v2837_v63  ;;  %v2422_v1 = vpop.f32.mrf.mxu0  ;;  %v2839_v2 = vpop.eup %2838 }
 0x18d   : > { %2852 = vtanh.f32 %v692_v0  ;;  %v707_v3 = vadd.f32 %v2422_v1, %v3355_v24 }
 0x18e   : > { %v2841_v4 = vpop.eup %2840  ;;  %v701_v5 = vpop.f32.mrf.mxu0 }
 0x18f   : > { %2520 = vmatprep.mubr.msk.f32.mxu1 %vm802_vm0, %v2841_v4  ;;  %v702_v6 = vadd.f32 %v3355_v24, %v701_v5  ;;  %2854 = vtanh.f32 %v707_v3 }
 0x190   : > { %2521 = vmatmul.mubr.msk.f32.gmra.mxu1 %vm802_vm0, %v2839_v2  ;;  %v2425_v7 = vpop.f32.mrf.mxu0  ;;  %v2843_v8 = vpop.eup %2842 }
 0x191   : > { %2856 = vtanh.f32 %v702_v6  ;;  %v717_v9 = vadd.f32 %v2425_v7, %v3355_v24 }
 0x192   : > { %v2845_v10 = vpop.eup %2844  ;;  %v711_v11 = vpop.f32.mrf.mxu0 }
 0x193   : > { %2523 = vmatprep.mubr.msk.f32.mxu1 %vm802_vm0, %v2845_v10  ;;  %v712_v12 = vadd.f32 %v3355_v24, %v711_v11  ;;  %2858 = vtanh.f32 %v717_v9 }
 0x194   : > { %2524 = vmatmul.mubr.msk.f32.gmra.mxu1 %vm802_vm0, %v2843_v8  ;;  %v2428_v13 = vpop.f32.mrf.mxu0  ;;  %v2847_v14 = vpop.eup %2846 }
 0x195   : > { %2860 = vtanh.f32 %v712_v12  ;;  %v727_v15 = vadd.f32 %v2428_v13, %v3355_v24 }
 0x196   : > { %v2849_v16 = vpop.eup %2848  ;;  %v721_v17 = vpop.f32.mrf.mxu0 }
 0x197   : > { %2526 = vmatprep.mubr.msk.f32.mxu1 %vm802_vm0, %v2849_v16  ;;  %v722_v18 = vadd.f32 %v3355_v24, %v721_v17  ;;  %2862 = vtanh.f32 %v727_v15 }
 0x198   : > { %2527 = vmatmul.mubr.msk.f32.gmra.mxu1 %vm802_vm0, %v2847_v14  ;;  %v2851_v19 = vpop.eup %2850 }
 0x199   : > { %2864 = vtanh.f32 %v722_v18 }
 0x19a   : > { %v2853_v20 = vpop.eup %2852 }
 0x19b   : > { %2529 = vmatprep.mubr.msk.f32.mxu1 %vm802_vm0, %v2853_v20 }
 0x19c   : > { %2530 = vmatmul.mubr.msk.f32.gmra.mxu1 %vm802_vm0, %v2851_v19  ;;  %v2855_v21 = vpop.eup %2854 }
 0x19e   : > { %v2857_v22 = vpop.eup %2856 }
 0x19f   : > { %2532 = vmatprep.mubr.msk.f32.mxu1 %vm802_vm0, %v2857_v22 }
 0x1a0   : > { %2533 = vmatmul.mubr.msk.f32.gmra.mxu1 %vm802_vm0, %v2855_v21  ;;  %v2859_v23 = vpop.eup %2858 }
 0x1a2   : > { %v2861_v25 = vpop.eup %2860 }
 0x1a3   : > { %2535 = vmatprep.mubr.msk.f32.mxu1 %vm802_vm0, %v2861_v25 }
 0x1a4   : > { %2536 = vmatmul.mubr.msk.f32.gmra.mxu1 %vm802_vm0, %v2859_v23  ;;  %v2863_v24 = vpop.eup %2862 }
 0x1a6   : > { %v2865_v26 = vpop.eup %2864 }
 0x1a7   : > { %2538 = vmatprep.mubr.msk.f32.mxu1 %vm802_vm0, %v2865_v26 }
 0x1a8   : > { %2539 = vmatmul.mubr.msk.f32.gmra.mxu1 %vm802_vm0, %v2863_v24 }
 0x1ec   : > { %v2447_v27 = vpop.f32.mrf.mxu1 }
 0x1ee   : > { %v1061_v28 = vpop.f32.mrf.mxu1 }
 0x1ef   : > { %1380 = vxpose.xlu0.b32.start [1/16] (narrow) %v1061_v28, 8 }
 0x1f0   : > { %v2450_v29 = vpop.f32.mrf.mxu1 }
 0x1f2   : > { %v1071_v30 = vpop.f32.mrf.mxu1 }
 0x1f3   : > { %1381 = vxpose.xlu0.b32.cont [2/16] (narrow) %v2447_v27, 8 }
 0x1f4   : > { %v2453_v31 = vpop.f32.mrf.mxu1 }
 0x1f6   : > { %v1081_v32 = vpop.f32.mrf.mxu1 }
 0x1f7   : > { %1382 = vxpose.xlu0.b32.cont [3/16] (narrow) %v1071_v30, 8 }
 0x1f8   : > { %v2456_v33 = vpop.f32.mrf.mxu1 }
 0x1fa   : > { %v1091_v34 = vpop.f32.mrf.mxu1 }
 0x1fb   : > { %1383 = vxpose.xlu0.b32.cont [4/16] (narrow) %v2450_v29, 8 }
 0x1fc   : > { %v2459_v35 = vpop.f32.mrf.mxu1 }
 0x1fe   : > { %v1101_v36 = vpop.f32.mrf.mxu1 }
 0x1ff   : > { %1384 = vxpose.xlu0.b32.cont [5/16] (narrow) %v1081_v32, 8 }
 0x200   : > { %v2462_v37 = vpop.f32.mrf.mxu1 }
 0x202   : > { %v1111_v38 = vpop.f32.mrf.mxu1 }
 0x203   : > { %1385 = vxpose.xlu0.b32.cont [6/16] (narrow) %v2453_v31, 8 }
 0x204   : > { %v2465_v39 = vpop.f32.mrf.mxu1 }
 0x206   : > { %v1121_v40 = vpop.f32.mrf.mxu1 }
 0x207   : > { %1386 = vxpose.xlu0.b32.cont [7/16] (narrow) %v1091_v34, 8 }
 0x208   : > { %v2468_v41 = vpop.f32.mrf.mxu1 }
 0x20a   : > { %v1131_v42 = vpop.f32.mrf.mxu1 }
 0x20b   : > { %1387 = vxpose.xlu0.b32.cont [8/16] (narrow) %v2456_v33, 8 }
 0x20c   : > { %v2471_v43 = vpop.f32.mrf.mxu1 }
 0x20e   : > { %v1141_v44 = vpop.f32.mrf.mxu1 }
 0x20f   : > { %1388 = vxpose.xlu0.b32.cont [9/16] (narrow) %v1101_v36, 8  ;;  %1496 = vxpose.xlu1.b32.start [1/16] (narrow) %v1141_v44, 8  ;;  %v2882_v36 = vld [vmem:[%s3210_s28 + $0x78] sm:$0xff] }
 0x210   : > { %v2474_v45 = vpop.f32.mrf.mxu1  ;;  %v2890_v44 = vld [vmem:[%s3210_s28 + $0x58] sm:$0xff] }
 0x212   : > { %v1151_v46 = vpop.f32.mrf.mxu1 }
 0x213   : > { %1389 = vxpose.xlu0.b32.cont [10/16] (narrow) %v2459_v35, 8  ;;  %1497 = vxpose.xlu1.b32.cont [2/16] (narrow) %v2471_v43, 8  ;;  %v3073_v35 = vmov 0.0   ;;  %v2889_v43 = vld [vmem:[%s3210_s28 + $0xe0] sm:$0xff] }
 0x214   : > { %v2477_v47 = vpop.f32.mrf.mxu1  ;;  %2541 = vmatprep.subr.mxu1 %v3073_v35  ;;  %2576 = vmatprep.subr.mxu0 %v3073_v35 }
 0x215   : > { %2542 = vmatpush3.msra.mxu1 %v2882_v36  ;;  %2573 = vmatprep.mubr.msk.f32.mxu1 %vm3074_vm2, %v3073_v35 }
 0x216   : > { %v1161_v48 = vpop.f32.mrf.mxu1  ;;  %2543 = vmatprep.subr.mxu1 %v3073_v35  ;;  %2608 = vmatprep.mubr.msk.f32.mxu0 %vm3074_vm2, %v3073_v35 }
 0x217   : > { %1390 = vxpose.xlu0.b32.cont [11/16] (narrow) %v1111_v38, 8  ;;  %1498 = vxpose.xlu1.b32.cont [3/16] (narrow) %v1151_v46, 8  ;;  %v2884_v38 = vld [vmem:[%s3210_s28 + $0x70] sm:$0xff] }
 0x218   : > { %v2480_v49 = vpop.f32.mrf.mxu1  ;;  %2544 = vmatpush3.msra.mxu1 %v2884_v38  ;;  %v2892_v46 = vld [vmem:[%s3210_s28 + $0x50] sm:$0xff]  ;;  %v2922_v38 = vld [vmem:[%s3210_s28 + $0x138] sm:$0xff] }
 0x219   : > { %2545 = vmatprep.subr.mxu1 %v3073_v35 }
 0x21a   : > { %v1171_v50 = vpop.f32.mrf.mxu1 }
 0x21b   : > { %1391 = vxpose.xlu0.b32.cont [12/16] (narrow) %v2462_v37, 8  ;;  %1499 = vxpose.xlu1.b32.cont [4/16] (narrow) %v2474_v45, 8  ;;  %v2883_v37 = vld [vmem:[%s3210_s28 + $0xf8] sm:$0xff] }
 0x21c   : > { %v2483_v51 = vpop.f32.mrf.mxu1  ;;  %2577 = vmatpush3.msra.mxu0 %v2883_v37  ;;  %v2891_v45 = vld [vmem:[%s3210_s28 + $0xd8] sm:$0xff]  ;;  %v2921_v37 = vld [vmem:[%s3210_s28 + $0x140] sm:$0xff] }
 0x21d   : > { %2578 = vmatprep.subr.mxu0 %v3073_v35 }
 0x21e   : > { %v1181_v52 = vpop.f32.mrf.mxu1 }
 0x21f   : > { %1392 = vxpose.xlu0.b32.cont [13/16] (narrow) %v1121_v40, 8  ;;  %1500 = vxpose.xlu1.b32.cont [5/16] (narrow) %v1161_v48, 8  ;;  %v2886_v40 = vld [vmem:[%s3210_s28 + $0x68] sm:$0xff] }
 0x220   : > { %v2486_v53 = vpop.f32.mrf.mxu1  ;;  %2546 = vmatpush3.msra.mxu1 %v2886_v40  ;;  %v2894_v48 = vld [vmem:[%s3210_s28 + $0x48] sm:$0xff] }
 0x221   : > { %2547 = vmatprep.subr.mxu1 %v3073_v35  ;;  %v2924_v40 = vld [vmem:[%s3210_s28 + $0x128] sm:$0xff] }
 0x222   : > { %v1191_v54 = vpop.f32.mrf.mxu1 }
 0x223   : > { %1393 = vxpose.xlu0.b32.cont [14/16] (narrow) %v2465_v39, 8  ;;  %1501 = vxpose.xlu1.b32.cont [6/16] (narrow) %v2477_v47, 8  ;;  %v2885_v39 = vld [vmem:[%s3210_s28 + $0xf0] sm:$0xff] }
 0x224   : > { %v2489_v55 = vpop.f32.mrf.mxu1  ;;  %2579 = vmatpush3.msra.mxu0 %v2885_v39  ;;  %v2893_v47 = vld [vmem:[%s3210_s28 + $0xd0] sm:$0xff] }
 0x225   : > { %2580 = vmatprep.subr.mxu0 %v3073_v35  ;;  %v2923_v39 = vld [vmem:[%s3210_s28 + $0x130] sm:$0xff] }
 0x226   : > { %v1201_v56 = vpop.f32.mrf.mxu1 }
 0x227   : > { %1394 = vxpose.xlu0.b32.cont [15/16] (narrow) %v1131_v42, 8  ;;  %1502 = vxpose.xlu1.b32.cont [7/16] (narrow) %v1171_v50, 8  ;;  %v2888_v42 = vld [vmem:[%s3210_s28 + $0x60] sm:$0xff] }
 0x228   : > { %v2492_v57 = vpop.f32.mrf.mxu1  ;;  %2548 = vmatpush3.msra.mxu1 %v2888_v42  ;;  %v2896_v50 = vld [vmem:[%s3210_s28 + $0x40] sm:$0xff] }
 0x229   : > { %2549 = vmatprep.subr.mxu1 %v3073_v35  ;;  %v2925_v42 = vld [vmem:[%s3210_s28 + $0x120] sm:$0xff] }
 0x22a   : > { %v1211_v58 = vpop.f32.mrf.mxu1  ;;  %2550 = vmatpush3.msra.mxu1 %v2890_v44  ;;  %v2926_v44 = vld [vmem:[%s3210_s28 + $0x118] sm:$0xff] }
 0x22b   : > { %1395 = vxpose.xlu0.b32.end [16/16] (narrow) %v2468_v41, 8  ;;  %1503 = vxpose.xlu1.b32.cont [8/16] (narrow) %v2480_v49, 8  ;;  %v2887_v41 = vld [vmem:[%s3210_s28 + $0xe8] sm:$0xff] }
 0x22c   : > { %v2495_v59 = vpop.f32.mrf.mxu1  ;;  %2581 = vmatpush3.msra.mxu0 %v2887_v41  ;;  %2551 = vmatprep.subr.mxu1 %v3073_v35  ;;  %v2895_v49 = vld [vmem:[%s3210_s28 + $0xc8] sm:$0xff] }
 0x22d   : > { %2582 = vmatprep.subr.mxu0 %v3073_v35  ;;  %2552 = vmatpush3.msra.mxu1 %v2892_v46  ;;  %v2927_v46 = vld [vmem:[%s3210_s28 + $0x110] sm:$0xff] }
 0x22e   : > { %v1221_v60 = vpop.f32.mrf.mxu1  ;;  %2583 = vmatpush3.msra.mxu0 %v2889_v43  ;;  %2553 = vmatprep.subr.mxu1 %v3073_v35 }
 0x22f   : > { %1504 = vxpose.xlu1.b32.cont [9/16] (narrow) %v1181_v52, 8  ;;  %1613 = vxpose.xlu0.b32.start [1/16] (narrow) %v1221_v60, 8  ;;  %v2898_v52 = vld [vmem:[%s3210_s28 + $0x38] sm:$0xff] }
 0x230   : > { %v2498_v61 = vpop.f32.mrf.mxu1  ;;  %2584 = vmatprep.subr.mxu0 %v3073_v35  ;;  %2554 = vmatpush3.msra.mxu1 %v2894_v48  ;;  %v2906_v60 = vld [vmem:[%s3210_s28 + $0x18] sm:$0xff] }
 0x231   : > { %2585 = vmatpush3.msra.mxu0 %v2891_v45  ;;  %2555 = vmatprep.subr.mxu1 %v3073_v35 }
 0x232   : > { %v1231_v62 = vpop.f32.mrf.mxu1  ;;  %2586 = vmatprep.subr.mxu0 %v3073_v35  ;;  %2556 = vmatpush3.msra.mxu1 %v2896_v50  ;;  %v2930_v50 = vld [vmem:[%s3210_s28 + $0x1f0] sm:$0xff] }
 0x233   : > { %1505 = vxpose.xlu1.b32.cont [10/16] (narrow) %v2483_v51, 8  ;;  %1614 = vxpose.xlu0.b32.cont [2/16] (narrow) %v2495_v59, 8  ;;  %v2897_v51 = vld [vmem:[%s3210_s28 + $0xc0] sm:$0xff] }
 0x234   : > { %v2501_v63 = vpop.f32.mrf.mxu1  ;;  %2587 = vmatpush3.msra.mxu0 %v2893_v47  ;;  %2557 = vmatprep.subr.mxu1 %v3073_v35  ;;  %v2905_v59 = vld [vmem:[%s3210_s28 + $0xa0] sm:$0xff]  ;;  %v2928_v47 = vld [vmem:[%s3210_s28 + $0x1f8] sm:$0xff] }
 0x235   : > { %2588 = vmatprep.subr.mxu0 %v3073_v35  ;;  %2558 = vmatpush3.msra.mxu1 %v2898_v52  ;;  %v2932_v52 = vld [vmem:[%s3210_s28 + $0x1e8] sm:$0xff] }
 0x236   : > { %v1241_v0 = vpop.f32.mrf.mxu1  ;;  %2589 = vmatpush3.msra.mxu0 %v2895_v49  ;;  %2559 = vmatprep.subr.mxu1 %v3073_v35  ;;  %v2929_v49 = vld [vmem:[%s3210_s28 + $0x108] sm:$0xff] }
 0x237   : > { %1506 = vxpose.xlu1.b32.cont [11/16] (narrow) %v1191_v54, 8  ;;  %1615 = vxpose.xlu0.b32.cont [3/16] (narrow) %v1231_v62, 8  ;;  %v2900_v54 = vld [vmem:[%s3210_s28 + $0x30] sm:$0xff] }
 0x238   : > { %v2504_v1 = vpop.f32.mrf.mxu1  ;;  %2590 = vmatprep.subr.mxu0 %v3073_v35  ;;  %2560 = vmatpush3.msra.mxu1 %v2900_v54  ;;  %v2908_v62 = vld [vmem:[%s3210_s28 + $0x10] sm:$0xff]  ;;  %v2934_v54 = vld [vmem:[%s3210_s28 + $0x1d8] sm:$0xff] }
 0x239   : > { %2591 = vmatpush3.msra.mxu0 %v2897_v51  ;;  %2561 = vmatprep.subr.mxu1 %v3073_v35  ;;  %v2931_v51 = vld [vmem:[%s3210_s28 + $0x100] sm:$0xff] }
 0x23a   : > { %v1251_v2 = vpop.f32.mrf.mxu1  ;;  %2592 = vmatprep.subr.mxu0 %v3073_v35 }
 0x23b   : > { %1507 = vxpose.xlu1.b32.cont [12/16] (narrow) %v2486_v53, 8  ;;  %1616 = vxpose.xlu0.b32.cont [4/16] (narrow) %v2498_v61, 8  ;;  %v2899_v53 = vld [vmem:[%s3210_s28 + $0xb8] sm:$0xff] }
 0x23c   : > { %v2507_v3 = vpop.f32.mrf.mxu1  ;;  %2593 = vmatpush3.msra.mxu0 %v2899_v53  ;;  %v2907_v61 = vld [vmem:[%s3210_s28 + $0x98] sm:$0xff]  ;;  %v2933_v53 = vld [vmem:[%s3210_s28 + $0x1e0] sm:$0xff] }
 0x23d   : > { %2594 = vmatprep.subr.mxu0 %v3073_v35 }
 0x23e   : > { %v1261_v4 = vpop.f32.mrf.mxu1 }
 0x23f   : > { %1508 = vxpose.xlu1.b32.cont [13/16] (narrow) %v1201_v56, 8  ;;  %1617 = vxpose.xlu0.b32.cont [5/16] (narrow) %v1241_v0, 8  ;;  %v2902_v56 = vld [vmem:[%s3210_s28 + $0x28] sm:$0xff] }
 0x240   : > { %v2510_v5 = vpop.f32.mrf.mxu1  ;;  %2562 = vmatpush3.msra.mxu1 %v2902_v56  ;;  %v2910_v0 = vld [vmem:[%s3210_s28 + $0x8] sm:$0xff]  ;;  %v2935_v56 = vld [vmem:[%s3210_s28 + $0x1d0] sm:$0xff] }
 0x241   : > { %2563 = vmatprep.subr.mxu1 %v3073_v35 }
 0x242   : > { %v1271_v6 = vpop.f32.mrf.mxu1 }
 0x243   : > { %1509 = vxpose.xlu1.b32.cont [14/16] (narrow) %v2489_v55, 8  ;;  %1618 = vxpose.xlu0.b32.cont [6/16] (narrow) %v2501_v63, 8  ;;  %v2901_v55 = vld [vmem:[%s3210_s28 + $0xb0] sm:$0xff] }
 0x244   : > { %v2513_v7 = vpop.f32.mrf.mxu1  ;;  %2595 = vmatpush3.msra.mxu0 %v2901_v55  ;;  %v2909_v63 = vld [vmem:[%s3210_s28 + $0x90] sm:$0xff] }
 0x245   : > { %2596 = vmatprep.subr.mxu0 %v3073_v35 }
 0x246   : > { %v1281_v8 = vpop.f32.mrf.mxu1 }
 0x247   : > { %1510 = vxpose.xlu1.b32.cont [15/16] (narrow) %v1211_v58, 8  ;;  %1619 = vxpose.xlu0.b32.cont [7/16] (narrow) %v1251_v2, 8  ;;  %v2904_v58 = vld [vmem:[%s3210_s28 + $0x20] sm:$0xff] }
 0x248   : > { %v2516_v9 = vpop.f32.mrf.mxu1  ;;  %2564 = vmatpush3.msra.mxu1 %v2904_v58  ;;  %v2912_v2 = vld [vmem:[%s3210_s28] sm:$0xff] }
 0x249   : > { %2565 = vmatprep.subr.mxu1 %v3073_v35  ;;  %v2937_v58 = vld [vmem:[%s3210_s28 + $0x1c0] sm:$0xff] }
 0x24a   : > { %v1291_v10 = vpop.f32.mrf.mxu1  ;;  %2566 = vmatpush3.msra.mxu1 %v2906_v60  ;;  %v2939_v60 = vld [vmem:[%s3210_s28 + $0x1b0] sm:$0xff] }
 0x24b   : > { %1511 = vxpose.xlu1.b32.end [16/16] (narrow) %v2492_v57, 8  ;;  %1620 = vxpose.xlu0.b32.cont [8/16] (narrow) %v2504_v1, 8  ;;  %v2903_v57 = vld [vmem:[%s3210_s28 + $0xa8] sm:$0xff] }
 0x24c   : > { %v2519_v11 = vpop.f32.mrf.mxu1  ;;  %2597 = vmatpush3.msra.mxu0 %v2903_v57  ;;  %2567 = vmatprep.subr.mxu1 %v3073_v35  ;;  %v2911_v1 = vld [vmem:[%s3210_s28 + $0x88] sm:$0xff] }
 0x24d   : > { %2598 = vmatprep.subr.mxu0 %v3073_v35  ;;  %2568 = vmatpush3.msra.mxu1 %v2908_v62  ;;  %v2936_v57 = vld [vmem:[%s3210_s28 + $0x1c8] sm:$0xff]  ;;  %v2941_v62 = vld [vmem:[%s3210_s28 + $0x1a0] sm:$0xff] }
 0x24e   : > { %v1301_v12 = vpop.f32.mrf.mxu1  ;;  %2599 = vmatpush3.msra.mxu0 %v2905_v59  ;;  %2569 = vmatprep.subr.mxu1 %v3073_v35  ;;  %v2938_v59 = vld [vmem:[%s3210_s28 + $0x1b8] sm:$0xff] }
 0x24f   : > { %1621 = vxpose.xlu0.b32.cont [9/16] (narrow) %v1261_v4, 8  ;;  %1730 = vxpose.xlu1.b32.start [1/16] (narrow) %v1301_v12, 8 }
 0x250   : > { %v2522_v13 = vpop.f32.mrf.mxu1  ;;  %2600 = vmatprep.subr.mxu0 %v3073_v35  ;;  %2570 = vmatpush3.msra.mxu1 %v2910_v0  ;;  %v2942_v0 = vld [vmem:[%s3210_s28 + $0x198] sm:$0xff] }
 0x251   : > { %2601 = vmatpush3.msra.mxu0 %v2907_v61  ;;  %2571 = vmatprep.subr.mxu1 %v3073_v35  ;;  %v2940_v61 = vld [vmem:[%s3210_s28 + $0x1a8] sm:$0xff] }
 0x252   : > { %v1311_v14 = vpop.f32.mrf.mxu1  ;;  %2602 = vmatprep.subr.mxu0 %v3073_v35  ;;  %2572 = vmatpush3.msra.mxu1 %v2912_v2  ;;  %v2943_v2 = vld [vmem:[%s3210_s28 + $0x190] sm:$0xff] }
 0x253   : > { %1622 = vxpose.xlu0.b32.cont [10/16] (narrow) %v2507_v3, 8  ;;  %1731 = vxpose.xlu1.b32.cont [2/16] (narrow) %v2519_v11, 8  ;;  %v2913_v3 = vld [vmem:[%s3210_s28 + $0x80] sm:$0xff] }
 0x254   : > { %v2525_v15 = vpop.f32.mrf.mxu1  ;;  %2603 = vmatpush3.msra.mxu0 %v2909_v63  ;;  %2611 = vmatprep.subr.mxu1 %v3073_v35 }
 0x255   : > { %2604 = vmatprep.subr.mxu0 %v3073_v35 }
 0x256   : > { %v1321_v16 = vpop.f32.mrf.mxu1  ;;  %2605 = vmatpush3.msra.mxu0 %v2911_v1 }
 0x257   : > { %1623 = vxpose.xlu0.b32.cont [11/16] (narrow) %v1271_v6, 8  ;;  %1732 = vxpose.xlu1.b32.cont [3/16] (narrow) %v1311_v14, 8 }
 0x258   : > { %v2528_v17 = vpop.f32.mrf.mxu1  ;;  %2606 = vmatprep.subr.mxu0 %v3073_v35 }
 0x259   : > { %2607 = vmatpush3.msra.mxu0 %v2913_v3  ;;  %v2944_v3 = vld [vmem:[%s3210_s28 + $0x188] sm:$0xff] }
 0x25a   : > { %v1331_v18 = vpop.f32.mrf.mxu1  ;;  %2646 = vmatprep.subr.mxu0 %v3073_v35 }
 0x25b   : > { %1624 = vxpose.xlu0.b32.cont [12/16] (narrow) %v2510_v5, 8  ;;  %1733 = vxpose.xlu1.b32.cont [4/16] (narrow) %v2522_v13, 8 }
 0x25c   : > { %v2531_v19 = vpop.f32.mrf.mxu1 }
 0x25e   : > { %v1341_v20 = vpop.f32.mrf.mxu1 }
 0x25f   : > { %1625 = vxpose.xlu0.b32.cont [13/16] (narrow) %v1281_v8, 8  ;;  %1734 = vxpose.xlu1.b32.cont [5/16] (narrow) %v1321_v16, 8 }
 0x260   : > { %v2534_v21 = vpop.f32.mrf.mxu1 }
 0x262   : > { %v1351_v22 = vpop.f32.mrf.mxu1 }
 0x263   : > { %1626 = vxpose.xlu0.b32.cont [14/16] (narrow) %v2513_v7, 8  ;;  %1735 = vxpose.xlu1.b32.cont [6/16] (narrow) %v2525_v15, 8 }
 0x264   : > { %v2537_v23 = vpop.f32.mrf.mxu1 }
 0x266   : > { %v1361_v25 = vpop.f32.mrf.mxu1 }
 0x267   : > { %1627 = vxpose.xlu0.b32.cont [15/16] (narrow) %v1291_v10, 8  ;;  %1736 = vxpose.xlu1.b32.cont [7/16] (narrow) %v1331_v18, 8 }
 0x268   : > { %v2540_v24 = vpop.f32.mrf.mxu1 }
 0x26a   : > { %v1371_v26 = vpop.f32.mrf.mxu1 }
 0x26b   : > { %1628 = vxpose.xlu0.b32.end [16/16] (narrow) %v2516_v9, 8  ;;  %1737 = vxpose.xlu1.b32.cont [8/16] (narrow) %v2528_v17, 8  ;;  %v3485_v27 = vpop.trf.xlu0 }
 0x26c   : > { %v1413_v28 = vsel %vm1412_vm1, %v3485_v27, -inf }
 0x26f   : > { %1738 = vxpose.xlu1.b32.cont [9/16] (narrow) %v1341_v20, 8 }
 0x273   : > { %1739 = vxpose.xlu1.b32.cont [10/16] (narrow) %v2531_v19, 8 }
 0x277   : > { %1740 = vxpose.xlu1.b32.cont [11/16] (narrow) %v1351_v22, 8 }
 0x27b   : > { %1741 = vxpose.xlu1.b32.cont [12/16] (narrow) %v2534_v21, 8 }
 0x27f   : > { %1742 = vxpose.xlu1.b32.cont [13/16] (narrow) %v1361_v25, 8 }
 0x283   : > { %1743 = vxpose.xlu1.b32.cont [14/16] (narrow) %v2537_v23, 8 }
 0x287   : > { %1744 = vxpose.xlu1.b32.cont [15/16] (narrow) %v1371_v26, 8 }
 0x28b   : > { %1745 = vxpose.xlu1.b32.end [16/16] (narrow) %v2540_v24, 8  ;;  %v3489_v29 = vpop.trf.xlu1 }
 0x28c   : > { %v1528_v30 = vsel %vm1412_vm1, %v3489_v29, -inf }
 0x298   : > { %1414 = vmax.xlane.f32.xlu0 %v1413_v28  ;;  %v2915_v28 = vld [vmem:[%s3210_s28 + $0x170] sm:$0xff] }
 0x2ab   : > { %v3493_v31 = vpop.trf.xlu0 }
 0x2ac   : > { %v1645_v32 = vsel %vm1412_vm1, %v3493_v31, -inf }
 0x2b2   : > { %1529 = vmax.xlane.f32.xlu1 %v1528_v30  ;;  %v2917_v30 = vld [vmem:[%s3210_s28 + $0x160] sm:$0xff] }
 0x2b6   : > { %1646 = vmax.xlane.f32.xlu1 %v1645_v32 }
 0x2cb   : > { %v3497_v33 = vpop.trf.xlu1 }
 0x2cc   : > { %v1762_v34 = vsel %vm1412_vm1, %v3497_v33, -inf }
 0x2cd   : > { %1763 = vmax.xlane.f32.xlu1 %v1762_v34  ;;  %v2920_v34 = vld [vmem:[%s3210_s28 + $0x148] sm:$0xff] }
 0x321   : > { %v1415_v4 = vpop.xlane.xlu0 %1414 }
 0x322   : > { %v1416_v5 = vsub.f32 %v3485_v27, %v1415_v4  ;;  %v2914_v27 = vld [vmem:[%s3210_s28 + $0x178] sm:$0xff]  ;;  %v2945_v4 = vld [vmem:[%s3210_s28 + $0x180] sm:$0xff] }
 0x324   : > { %v1417_v6 = vmul.f32 1.442695, %v1416_v5 }
 0x326   : > { %2866 = vpow2.f32 %v1417_v6 }
 0x333   : > { %v2867_v7 = vpop.eup %2866 }
 0x334   : > { %v1419_v8 = vsel %vm1412_vm1, %v2867_v7, 0.0 }
 0x335   : > { %1420 = vadd.xlane.f32.xlu0 %v1419_v8 }
 0x33b   : > { %v1530_v9 = vpop.xlane.xlu1 %1529 }
 0x33c   : > { %v1531_v10 = vsub.f32 %v3489_v29, %v1530_v9  ;;  %v2916_v29 = vld [vmem:[%s3210_s28 + $0x168] sm:$0xff] }
 0x33e   : > { %v1532_v11 = vmul.f32 1.442695, %v1531_v10 }
 0x33f   : > { %v1647_v12 = vpop.xlane.xlu1 %1646 }
 0x340   : > { %2868 = vpow2.f32 %v1532_v11  ;;  %v1648_v13 = vsub.f32 %v3493_v31, %v1647_v12  ;;  %v2918_v31 = vld [vmem:[%s3210_s28 + $0x158] sm:$0xff] }
 0x342   : > { %v1649_v14 = vmul.f32 1.442695, %v1648_v13 }
 0x344   : > { %2870 = vpow2.f32 %v1649_v14 }
 0x34d   : > { %v3575_v15 = vpop.eup %2868 }
 0x34e   : > { %v1534_v16 = vsel %vm1412_vm1, %v3575_v15, 0.0 }
 0x34f   : > { %1535 = vadd.xlane.f32.xlu1 %v1534_v16 }
 0x351   : > { %v3579_v17 = vpop.eup %2870 }
 0x352   : > { %v1651_v18 = vsel %vm1412_vm1, %v3579_v17, 0.0 }
 0x353   : > { %1652 = vadd.xlane.f32.xlu0 %v1651_v18 }
 0x356   : > { %v1764_v19 = vpop.xlane.xlu1 %1763 }
 0x357   : > { %v1765_v20 = vsub.f32 %v3497_v33, %v1764_v19  ;;  %v2919_v33 = vld [vmem:[%s3210_s28 + $0x150] sm:$0xff]  ;;  %s3075_s28 = smov [#allocation6]  }
 0x358   : > { %s2978_s16 = sshll.u32 %s3075_s28, 4  ;;  %s2979_s16 = int_to_ptr.vmem [resolvable:$false] %s2978_s16 }
 0x359   : > { %v1766_v21 = vmul.f32 1.442695, %v1765_v20  ;;  %s2980_s8 = scalar_lea.vmem %s2979_s16, 256  ;;  %p2981_p5 = scmp.lt.s32.totalorder %s3668_s13, %s2979_s16 }
 0x35a   : > { %p2982_p7 = scmp.lt.s32.totalorder %s2980_s8, %s2974_s15 }
 0x35b   : > { %2872 = vpow2.f32 %v1766_v21 }
 0x35c   : > { %p2983_p8 = por %p2982_p7, %p2981_p5 }
 0x35e   : > { %p2984_p10 = pnand %p2983_p8, %p2977_p4 }
 0x368   : > { %v3584_v22 = vpop.eup %2872 }
 0x369   : > { %v1768_v23 = vsel %vm1412_vm1, %v3584_v22, 0.0 }
 0x36a   : > { %1769 = vadd.xlane.f32.xlu1 %v1768_v23 }
 0x3be   : > { %v1421_v25 = vpop.xlane.xlu0 %1420 }
 0x3bf   : > { %2874 = vrcp.f32 %v1421_v25 }
 0x3cc   : > { %v2875_v24 = vpop.eup %2874 }
 0x3cd   : > { %v1423_v26 = vmul.f32 %v2875_v24, %v2867_v7 }
 0x3cf   : > { %2574 = vmatmul.mubr.f32.vlgmr.msra.gmra.mxu1 %v1423_v26  ;;  %1424 = vst [vmem:[%s3591_s11] sm:$0x3] %v1423_v26 }
 0x3d0   : > { %2612 = vmatpush3.msra.mxu1 %v2914_v27  ;;  %2643 = vmatprep.mubr.msk.f32.mxu1 %vm3074_vm2, %v3073_v35 }
 0x3d1   : > { %2613 = vmatprep.subr.mxu1 %v3073_v35 }
 0x3d2   : > { %2614 = vmatpush3.msra.mxu1 %v2915_v28 }
 0x3d3   : > { %2615 = vmatprep.subr.mxu1 %v3073_v35 }
 0x3d4   : > { %2616 = vmatpush3.msra.mxu1 %v2916_v29 }
 0x3d5   : > { %2617 = vmatprep.subr.mxu1 %v3073_v35 }
 0x3d6   : > { %2618 = vmatpush3.msra.mxu1 %v2917_v30 }
 0x3d7   : > { %2619 = vmatprep.subr.mxu1 %v3073_v35 }
 0x3d8   : > { %2620 = vmatpush3.msra.mxu1 %v2918_v31  ;;  %v1536_v32 = vpop.xlane.xlu1 %1535 }
 0x3d9   : > { %2621 = vmatprep.subr.mxu1 %v3073_v35  ;;  %2876 = vrcp.f32 %v1536_v32 }
 0x3da   : > { %2622 = vmatpush3.msra.mxu1 %v2919_v33 }
 0x3db   : > { %2623 = vmatprep.subr.mxu1 %v3073_v35 }
 0x3dc   : > { %2624 = vmatpush3.msra.mxu1 %v2920_v34  ;;  %v1653_v36 = vpop.xlane.xlu0 %1652 }
 0x3dd   : > { %2625 = vmatprep.subr.mxu1 %v3073_v35  ;;  %2878 = vrcp.f32 %v1653_v36 }
 0x3de   : > { %2626 = vmatpush3.msra.mxu1 %v2921_v37 }
 0x3df   : > { %2627 = vmatprep.subr.mxu1 %v3073_v35 }
 0x3e0   : > { %2628 = vmatpush3.msra.mxu1 %v2922_v38 }
 0x3e1   : > { %2629 = vmatprep.subr.mxu1 %v3073_v35 }
 0x3e2   : > { %2630 = vmatpush3.msra.mxu1 %v2923_v39 }
 0x3e3   : > { %2631 = vmatprep.subr.mxu1 %v3073_v35 }
 0x3e4   : > { %2632 = vmatpush3.msra.mxu1 %v2924_v40 }
 0x3e5   : > { %2633 = vmatprep.subr.mxu1 %v3073_v35 }
 0x3e6   : > { %v2877_v41 = vpop.eup %2876  ;;  %2634 = vmatpush3.msra.mxu1 %v2925_v42 }
 0x3e7   : > { %2635 = vmatprep.subr.mxu1 %v3073_v35  ;;  %v1538_v43 = vmul.f32 %v2877_v41, %v3575_v15 }
 0x3e8   : > { %2636 = vmatpush3.msra.mxu1 %v2926_v44 }
 0x3e9   : > { %2637 = vmatprep.subr.mxu1 %v3073_v35  ;;  %2609 = vmatmul.mubr.f32.vlgmr.msra.gmra.mxu0 %v1538_v43  ;;  %2063 = vst [vmem:[%s3591_s11 + $0x2] sm:$0x3] %v1538_v43 }
 0x3ea   : > { %v2879_v45 = vpop.eup %2878  ;;  %2638 = vmatpush3.msra.mxu1 %v2927_v46  ;;  %2647 = vmatpush3.msra.mxu0 %v2928_v47 }
 0x3eb   : > { %2639 = vmatprep.subr.mxu1 %v3073_v35  ;;  %2648 = vmatprep.subr.mxu0 %v3073_v35  ;;  %v1655_v48 = vmul.f32 %v2879_v45, %v3579_v17 }
 0x3ec   : > { %2640 = vmatpush3.msra.mxu1 %v2929_v49  ;;  %2649 = vmatpush3.msra.mxu0 %v2930_v50 }
 0x3ed   : > { %2641 = vmatprep.subr.mxu1 %v3073_v35  ;;  %2650 = vmatprep.subr.mxu0 %v3073_v35  ;;  %2065 = vst [vmem:[%s3591_s11 + $0x4] sm:$0x3] %v1655_v48 }
 0x3ee   : > { %2642 = vmatpush3.msra.mxu1 %v2931_v51  ;;  %2651 = vmatpush3.msra.mxu0 %v2932_v52 }
 0x3ef   : > { %2644 = vmatmul.mubr.f32.vlgmr.msra.gmra.mxu1 %v1655_v48  ;;  %2652 = vmatprep.subr.mxu0 %v3073_v35 }
 0x3f0   : > { %2653 = vmatpush3.msra.mxu0 %v2933_v53  ;;  %2678 = vmatprep.mubr.msk.f32.mxu0 %vm3074_vm2, %v3073_v35 }
 0x3f1   : > { %2654 = vmatprep.subr.mxu0 %v3073_v35 }
 0x3f2   : > { %2655 = vmatpush3.msra.mxu0 %v2934_v54 }
 0x3f3   : > { %2656 = vmatprep.subr.mxu0 %v3073_v35  ;;  %v1770_v55 = vpop.xlane.xlu1 %1769 }
 0x3f4   : > { %2657 = vmatpush3.msra.mxu0 %v2935_v56  ;;  %2880 = vrcp.f32 %v1770_v55 }
 0x3f5   : > { %2658 = vmatprep.subr.mxu0 %v3073_v35 }
 0x3f6   : > { %2659 = vmatpush3.msra.mxu0 %v2936_v57 }
 0x3f7   : > { %2660 = vmatprep.subr.mxu0 %v3073_v35 }
 0x3f8   : > { %2661 = vmatpush3.msra.mxu0 %v2937_v58 }
 0x3f9   : > { %2662 = vmatprep.subr.mxu0 %v3073_v35 }
 0x3fa   : > { %2663 = vmatpush3.msra.mxu0 %v2938_v59 }
 0x3fb   : > { %2664 = vmatprep.subr.mxu0 %v3073_v35 }
 0x3fc   : > { %2665 = vmatpush3.msra.mxu0 %v2939_v60 }
 0x3fd   : > { %2666 = vmatprep.subr.mxu0 %v3073_v35 }
 0x3fe   : > { %2667 = vmatpush3.msra.mxu0 %v2940_v61 }
 0x3ff   : > { %2668 = vmatprep.subr.mxu0 %v3073_v35 }
 0x400   : > { %2669 = vmatpush3.msra.mxu0 %v2941_v62 }
 0x401   : > { %v2881_v63 = vpop.eup %2880  ;;  %2670 = vmatprep.subr.mxu0 %v3073_v35 }
 0x402   : > { %2671 = vmatpush3.msra.mxu0 %v2942_v0  ;;  %v1772_v1 = vmul.f32 %v2881_v63, %v3584_v22 }
 0x403   : > { %2672 = vmatprep.subr.mxu0 %v3073_v35 }
 0x404   : > { %2673 = vmatpush3.msra.mxu0 %v2943_v2  ;;  %2067 = vst [vmem:[%s3591_s11 + $0x6] sm:$0x3] %v1772_v1 }
 0x405   : > { %2674 = vmatprep.subr.mxu0 %v3073_v35 }
 0x406   : > { %2675 = vmatpush3.msra.mxu0 %v2944_v3 }
 0x407   : > { %2676 = vmatprep.subr.mxu0 %v3073_v35 }
 0x408   : > { %2677 = vmatpush3.msra.mxu0 %v2945_v4 }
 0x409   : > { %2679 = vmatmul.mubr.f32.vlgmr.msra.gmra.mxu0 %v1772_v1 }
 0x40a   : > { %2987 = shalt.err (!%p2984_p10)
}
 0x40b   : > { %s2988_s7 = scalar_lea.hbm %s3675_s12, 128  ;;  %s2992_s11 = scalar_lea.hbm %s3761_s5, 256 }
 0x40c   : > { %p2989_p0 = scmp.ne.s32.totalorder %s3675_s12, %s2988_s7  ;;  %p2993_p1 = scmp.lt.s32.totalorder %s3675_s12, %s3761_s5 }
 0x40d   : > { %p2994_p3 = scmp.lt.s32.totalorder %s2992_s11, %s2988_s7 }
 0x40e   : > { %p2990_p2 = pnand %p2989_p0, %p3770_p12 }
 0x40f   : > { %p2995_p6 = por %p2994_p3, %p2993_p1 }
 0x410   : > { %p2991_p9 = pneg %p2990_p2 }
 0x412   : > { %p2996_p11 = pnand %p2995_p6, %p2991_p9 }
 0x414   : > { %2999 = shalt.err (!%p2996_p11)
}
 0x415   : > { %s3076_s15 = smov 32   ;;  %s3077_s28 = smov 2  }
 0x416   : > { %2684 = dma.vmem_to_hbm [thread:$0]  (%p3770_p12), %s3668_s13, 128, %s3675_s12, %s1853_s14, %s3076_s15, %s3076_s15, %s3077_s28  }
 0x417   : > { %s247_s16 = scalar_lea.vmem [#allocation5], %s1996_s10  ;;  %s3712_s10 = scalar_lea.hbm %s3760_s4, %s2079_s17 }
 0x418   : > { %s1866_s8 = sshll.u32 %s247_s16, 4  ;;  %s1848_s13 = scalar_lea.sflag [#allocation4], %s3206_s23  ;;  %s3705_s8 = int_to_ptr.vmem [resolvable:$true] %s1866_s8 }
 0x419   : > { %s3000_s12 = scalar_lea.vmem %s3705_s8, 128  ;;  %s3078_s14 = smov [#allocation5]  }
 0x41a   : > { %p3001_p13 = scmp.ne.s32.totalorder %s3705_s8, %s3000_s12  ;;  %s3004_s29 = sshll.u32 %s3078_s14, 4  ;;  %s3005_s29 = int_to_ptr.vmem [resolvable:$false] %s3004_s29 }
 0x41b   : > { %s3006_s22 = scalar_lea.vmem %s3005_s29, 256  ;;  %p3007_p7 = scmp.lt.s32.totalorder %s3705_s8, %s3005_s29 }
 0x41c   : > { %p3002_p4 = pnand %p3001_p13, %p3770_p12  ;;  %p3008_p8 = scmp.lt.s32.totalorder %s3006_s22, %s3000_s12 }
 0x41e   : > { %p3003_p5 = pneg %p3002_p4  ;;  %p3009_p10 = por %p3008_p8, %p3007_p7 }
 0x420   : > { %p3010_p0 = pnand %p3009_p10, %p3003_p5 }
 0x48f   : > { %v1491_v35 = vpop.f32.mrf.mxu1 }
 0x490   : > { %1495 = vst [vmem:[%s247_s16] sm:$0x3] %v1491_v35 }
 0x491   : > { %v2575_v5 = vpop.f32.mrf.mxu1 }
 0x4a9   : > { %v1607_v6 = vpop.f32.mrf.mxu0 }
 0x4aa   : > { %2064 = vst [vmem:[%s247_s16 + $0x2] sm:$0x3] %v1607_v6 }
 0x4ab   : > { %v2610_v7 = vpop.f32.mrf.mxu0 }
 0x4af   : > { %v1724_v8 = vpop.f32.mrf.mxu1 }
 0x4b0   : > { %2066 = vst [vmem:[%s247_s16 + $0x4] sm:$0x3] %v1724_v8 }
 0x4b1   : > { %v2645_v9 = vpop.f32.mrf.mxu1 }
 0x4c9   : > { %v1841_v10 = vpop.f32.mrf.mxu0 }
 0x4ca   : > { %2068 = vst [vmem:[%s247_s16 + $0x6] sm:$0x3] %v1841_v10 }
 0x4cb   : > { %v2680_v11 = vpop.f32.mrf.mxu0 }
 0x4cc   : > { %3013 = shalt.err (!%p3010_p0)
}
 0x4cd   : > { %s3014_s17 = scalar_lea.hbm %s3712_s10, 128  ;;  %s3018_s25 = scalar_lea.hbm %s3760_s4, 256 }
 0x4ce   : > { %p3015_p2 = scmp.ne.s32.totalorder %s3712_s10, %s3014_s17  ;;  %p3019_p3 = scmp.lt.s32.totalorder %s3712_s10, %s3760_s4 }
 0x4cf   : > { %p3020_p6 = scmp.lt.s32.totalorder %s3018_s25, %s3014_s17 }
 0x4d0   : > { %p3016_p9 = pnand %p3015_p2, %p3770_p12 }
 0x4d1   : > { %p3021_p11 = por %p3020_p6, %p3019_p3 }
 0x4d2   : > { %p3017_p1 = pneg %p3016_p9 }
 0x4d4   : > { %p3022_p13 = pnand %p3021_p11, %p3017_p1 }
 0x4d6   : > { %3025 = shalt.err (!%p3022_p13)
}
 0x4d7   : > { %2683 = dma.vmem_to_hbm [thread:$0]  (%p3770_p12), %s3705_s8, 128, %s3712_s10, %s1848_s13, %s3076_s15, %s3076_s15, %s3077_s28  }
 0x4d8 PF: > { %s1897_s7 = sand.u32 1, %s3056_s18   ;;  %p3771_p4 = scmp.ne.s32.totalorder %s3767_s6, 0 }
 0x4d9   : > { %p3772_p5 = scmp.ge.s32.totalorder %s3068_s21, 2  ;;  %s1898_s9 = scalar_lea.sflag [#allocation4], %s1897_s7 }
 0x4db   : > { %p2692_p7 = pnand %p3772_p5, %p3771_p4 }
 0x4dd   : > { %p2693_p8 = pneg %p2692_p7 }
 0x4df   : > { %3047 = dma.done.wait (%p2693_p8), %s1898_s9, 128  }
 0x4e0   : > { %3049 = vsyncadd (%p2693_p8), %s1898_s9, 4294967168  ;;  %s1907_s12 = scalar_lea.sflag [#allocation7], %s1897_s7 }
 0x4e1   : > { %3051 = dma.done.wait (%p2693_p8), %s1907_s12, 128  }
 0x4e2   : > { %3053 = vsyncadd (%p2693_p8), %s1907_s12, 4294967168  ;;  %p22_p12 = scmp.ge.s32.totalorder %s3134_s24, 4   ;;  %s3773_s18 = smov %s3060_s19 }
 0x4e3   : > { %s3774_s19 = smov %s3064_s20  ;;  %s3775_s20 = smov %s3146_s27 }
 0x4e4   : > { %s3776_s21 = smov %s3134_s24  ;;  %24 = sbr.rel (!%p22_p12) target bundleno = 7 (0x7), region = 104 }
 0x4e9   :  { %1912 = vsyncpa [#allocation3], 1 }
 0x4ea   :  { %1914 = vsyncpa [#allocation3 + $0x1], 1 }
 0x4eb   :  { %1915 = vsyncpa [#allocation4], 1 }
 0x4ec   :  { %1917 = vsyncpa [#allocation4 + $0x1], 1 }
 0x4ed   :  { %1918 = vsyncpa [#allocation7], 1 }
 0x4ee   :  { %1920 = vsyncpa [#allocation7 + $0x1], 1 }

</bundles_post_ra>
